<compile_context>
chip_gen: v6e
topology: v6e:2x2x1
jax: 0.10.0
libtpu: 0.0.40
codegen_flags: <defaults>
</compile_context>

<pallas_src>
import functools
import math

import numpy as np
import jax
import jax.numpy as jnp
from jax import lax
from jax.experimental import pallas as pl
from jax.experimental.pallas import tpu as pltpu


_BLOCK_VMEM_LIMIT = 32 * 1024 * 1024   # safe scoped-VMEM budget on v5e/v6e/v7x
_HEAD_VMEM_LIMIT = 32 * 1024 * 1024


# ---------------------------------------------------------------------------
# In-kernel helpers (traced inside Pallas kernel bodies)
# ---------------------------------------------------------------------------
def _mm(x_f32, w_bf16):
    """bf16 MXU matmul with f32 accumulation."""
    return jnp.dot(x_f32.astype(jnp.bfloat16), w_bf16,
                   preferred_element_type=jnp.float32)


def _layer_norm(x, g, b, eps=1e-5):
    mu = jnp.mean(x, axis=-1, keepdims=True)
    var = jnp.mean((x - mu) * (x - mu), axis=-1, keepdims=True)
    return (x - mu) * lax.rsqrt(var + eps) * g + b


def _mha(xq, xkv, wq, wk, wv, bq, bk, bv, wo, bo, *, causal):
    """Multi-head attention with head-major batched matmuls (no slicing).

    xq:  (Lq, D) f32, xkv: (Lk, D) f32 or None (self-attention)
    wq/wk/wv: (H, D, Dh) bf16, bq/bk/bv: (H, 1, Dh) f32
    wo: (H, Dh, D) bf16, bo: (1, D) f32
    Returns (Lq, D) f32 including the output projection + bias.
    """
    H, D, Dh = wq.shape
    Lq = xq.shape[0]
    scale = 1.0 / math.sqrt(Dh)

    xq_b = jnp.broadcast_to(xq.astype(jnp.bfloat16)[None], (H, Lq, D))
    if xkv is None:
        Lk = Lq
        xkv_b = xq_b
    else:
        Lk = xkv.shape[0]
        xkv_b = jnp.broadcast_to(xkv.astype(jnp.bfloat16)[None], (H, Lk, D))

    # Projections: one batched MXU call per tensor, heads as the batch dim.
    q = jnp.einsum("hld,hdk->hlk", xq_b, wq,
                   preferred_element_type=jnp.float32) + bq       # (H, Lq, Dh)
    k = jnp.einsum("hld,hdk->hlk", xkv_b, wk,
                   preferred_element_type=jnp.float32) + bk       # (H, Lk, Dh)
    v = jnp.einsum("hld,hdk->hlk", xkv_b, wv,
                   preferred_element_type=jnp.float32) + bv       # (H, Lk, Dh)

    # Scores (f32) with the scale folded into q.
    s = jnp.einsum("hqd,hkd->hqk",
                   (q * scale).astype(jnp.bfloat16), k.astype(jnp.bfloat16),
                   preferred_element_type=jnp.float32)            # (H, Lq, Lk)
    if causal:
        row = lax.broadcasted_iota(jnp.int32, (H, Lq, Lk), 1)
        col = lax.broadcasted_iota(jnp.int32, (H, Lq, Lk), 2)
        s = jnp.where(col <= row, s, jnp.float32(-1e9))

    # Exact softmax in f32 (matches the PyTorch reference numerics).
    m = jnp.max(s, axis=-1, keepdims=True)
    p = jnp.exp(s - m)
    p = p / jnp.sum(p, axis=-1, keepdims=True)

    o = jnp.einsum("hqk,hkd->hqd", p.astype(jnp.bfloat16), v.astype(jnp.bfloat16),
                   preferred_element_type=jnp.float32)            # (H, Lq, Dh)

    # Output projection per head, summed over heads (== concat @ Wo).
    y = jnp.einsum("hqd,hdk->hqk", o.astype(jnp.bfloat16), wo,
                   preferred_element_type=jnp.float32)            # (H, Lq, D)
    return jnp.sum(y, axis=0) + bo                                # (Lq, D)


# ---------------------------------------------------------------------------
# Fused Pallas kernels (one per transformer block, plus the output head)
# ---------------------------------------------------------------------------
def _encoder_block_kernel(x_ref, wq_ref, wk_ref, wv_ref, bq_ref, bk_ref, bv_ref,
                          wo_ref, bo_ref, ln1g_ref, ln1b_ref,
                          w1_ref, b1_ref, w2_ref, b2_ref, ln2g_ref, ln2b_ref,
                          o_ref):
    x = x_ref[0]                                                   # (L, D) f32
    a = _mha(x, None,
             wq_ref[...], wk_ref[...], wv_ref[...],
             bq_ref[...], bk_ref[...], bv_ref[...],
             wo_ref[...], bo_ref[...], causal=False)
    x1 = _layer_norm(x + a, ln1g_ref[...], ln1b_ref[...])
    h = jnp.maximum(_mm(x1, w1_ref[...]) + b1_ref[...], 0.0)
    y2 = _mm(h, w2_ref[...]) + b2_ref[...]
    o_ref[0] = _layer_norm(x1 + y2, ln2g_ref[...], ln2b_ref[...])


def _decoder_block_kernel(x_ref, enc_ref,
                          swq_ref, swk_ref, swv_ref, sbq_ref, sbk_ref, sbv_ref,
                          swo_ref, sbo_ref, ln1g_ref, ln1b_ref,
                          cwq_ref, cwk_ref, cwv_ref, cbq_ref, cbk_ref, cbv_ref,
                          cwo_ref, cbo_ref, ln2g_ref, ln2b_ref,
                          w1_ref, b1_ref, w2_ref, b2_ref, ln3g_ref, ln3b_ref,
                          o_ref):
    x = x_ref[0]                                                   # (Ld, D)
    enc = enc_ref[0]                                               # (Le, D)
    # -- causal self attention -------------------------------------------------
    a = _mha(x, None,
             swq_ref[...], swk_ref[...], swv_ref[...],
             sbq_ref[...], sbk_ref[...], sbv_ref[...],
             swo_ref[...], sbo_ref[...], causal=True)
    x1 = _layer_norm(x + a, ln1g_ref[...], ln1b_ref[...])
    # -- cross attention over encoder outputs ----------------------------------
    a2 = _mha(x1, enc,
              cwq_ref[...], cwk_ref[...], cwv_ref[...],
              cbq_ref[...], cbk_ref[...], cbv_ref[...],
              cwo_ref[...], cbo_ref[...], causal=False)
    x2 = _layer_norm(x1 + a2, ln2g_ref[...], ln2b_ref[...])
    # -- FFN --------------------------------------------------------------------
    h = jnp.maximum(_mm(x2, w1_ref[...]) + b1_ref[...], 0.0)
    y3 = _mm(h, w2_ref[...]) + b2_ref[...]
    o_ref[0] = _layer_norm(x2 + y3, ln3g_ref[...], ln3b_ref[...]).astype(o_ref.dtype)


def _head_kernel(x_ref, w_ref, b_ref, o_ref):
    # x_ref / w_ref are already bf16; accumulate in f32.
    o_ref[...] = (jnp.dot(x_ref[...], w_ref[...],
                          preferred_element_type=jnp.float32) + b_ref[...])


# ---------------------------------------------------------------------------
# Wrappers (build BlockSpecs / grids and call pallas_call)
# ---------------------------------------------------------------------------
def _rep_spec(shape):
    """Full-array block replicated across the batch grid axis."""
    nd = len(shape)
    return pl.BlockSpec(shape, lambda b, _nd=nd: (0,) * _nd)


def encoder_block(x, p, num_heads):
    B, L, D = x.shape
    Fh = p["w1"].shape[1]
    Dh = D // num_heads
    args = (x,
            p["wq"], p["wk"], p["wv"], p["bq"], p["bk"], p["bv"],
            p["wo"], p["bo"], p["ln1_g"], p["ln1_b"],
            p["w1"], p["b1"], p["w2"], p["b2"], p["ln2_g"], p["ln2_b"])
    in_specs = ([pl.BlockSpec((1, L, D), lambda b: (b, 0, 0))]
                + [_rep_spec(a.shape) for a in args[1:]])
    flops = B * (2 * L * D * (4 * D + 2 * Fh) + 4 * num_heads * L * L * Dh)
    return pl.pallas_call(
        _encoder_block_kernel,
        grid=(B,),
        in_specs=in_specs,
        out_specs=pl.BlockSpec((1, L, D), lambda b: (b, 0, 0)),
        out_shape=jax.ShapeDtypeStruct((B, L, D), jnp.float32),
        compiler_params=pltpu.CompilerParams(
            dimension_semantics=("parallel",),
            vmem_limit_bytes=_BLOCK_VMEM_LIMIT),
        cost_estimate=pl.CostEstimate(
            flops=int(flops),
            transcendentals=int(B * num_heads * L * L),
            bytes_accessed=int(8 * x.size + 2 * sum(a.size for a in args[1:]))),
    )(*args)


def decoder_block(x, enc_out, p, num_heads):
    B, Ld, D = x.shape
    Le = enc_out.shape[1]
    Fh = p["w1"].shape[1]
    Dh = D // num_heads
    args = (x, enc_out,
            p["s_wq"], p["s_wk"], p["s_wv"], p["s_bq"], p["s_bk"], p["s_bv"],
            p["s_wo"], p["s_bo"], p["ln1_g"], p["ln1_b"],
            p["c_wq"], p["c_wk"], p["c_wv"], p["c_bq"], p["c_bk"], p["c_bv"],
            p["c_wo"], p["c_bo"], p["ln2_g"], p["ln2_b"],
            p["w1"], p["b1"], p["w2"], p["b2"], p["ln3_g"], p["ln3_b"])
    in_specs = ([pl.BlockSpec((1, Ld, D), lambda b: (b, 0, 0)),
                 pl.BlockSpec((1, Le, D), lambda b: (b, 0, 0))]
                + [_rep_spec(a.shape) for a in args[2:]])
    flops = B * (2 * Ld * D * (6 * D + 2 * Fh) + 4 * Le * D * D
                 + 4 * num_heads * Ld * (Ld + Le) * Dh)
    return pl.pallas_call(
        _decoder_block_kernel,
        grid=(B,),
        in_specs=in_specs,
        out_specs=pl.BlockSpec((1, Ld, D), lambda b: (b, 0, 0)),
        out_shape=jax.ShapeDtypeStruct((B, Ld, D), jnp.bfloat16),   # feeds the head
        compiler_params=pltpu.CompilerParams(
            dimension_semantics=("parallel",),
            vmem_limit_bytes=_BLOCK_VMEM_LIMIT),
        cost_estimate=pl.CostEstimate(
            flops=int(flops),
            transcendentals=int(B * num_heads * Ld * (Ld + Le)),
            bytes_accessed=int(6 * x.size + 4 * enc_out.size
                               + 2 * sum(a.size for a in args[2:]))),
    )(*args)


def _pick_tile(total, candidates):
    for c in candidates:
        if total % c == 0:
            return c
    return total


def output_head(x2d_bf16, w_p, b_p, vocab):
    """Tiled lane-dense vocab projection (weights pre-padded/cast at init)."""
    M, K = x2d_bf16.shape
    Vp = w_p.shape[1]
    Mp = ((M + 15) // 16) * 16           # bf16 sublane-pack-friendly row padding
    x_p = x2d_bf16 if Mp == M else (
        jnp.zeros((Mp, K), jnp.bfloat16).at[:M].set(x2d_bf16))
    # Large lane-dense tiles feed the MXU well; shapes degrade gracefully.
    tm = _pick_tile(Mp, (512, 256, 128, 64, 32, 16))
    tn = _pick_tile(Vp, (1024, 512, 256, 128))
    grid = (Mp // tm, Vp // tn)
    out = pl.pallas_call(
        _head_kernel,
        grid=grid,
        in_specs=[
            pl.BlockSpec((tm, K), lambda i, j: (i, 0)),
            pl.BlockSpec((K, tn), lambda i, j: (0, j)),
            pl.BlockSpec((1, tn), lambda i, j: (0, j)),
        ],
        out_specs=pl.BlockSpec((tm, tn), lambda i, j: (i, j)),
        out_shape=jax.ShapeDtypeStruct((Mp, Vp), jnp.float32),
        compiler_params=pltpu.CompilerParams(
            dimension_semantics=("parallel", "parallel"),
            vmem_limit_bytes=_HEAD_VMEM_LIMIT),
        cost_estimate=pl.CostEstimate(
            flops=2 * Mp * K * Vp,
            transcendentals=0,
            bytes_accessed=2 * Mp * K + 2 * K * Vp + 4 * Mp * Vp),
    )(x_p, w_p, b_p)
    return out[:M, :vocab]


# ---------------------------------------------------------------------------
# One-time parameter packing (head-major, bf16, padded) — done at init only.
# ---------------------------------------------------------------------------
def _pack_heads_in(w, num_heads):      # (D, D) -> (H, D, Dh) bf16 (column blocks)
    D = w.shape[0]
    Dh = D // num_heads
    return jnp.transpose(w.reshape(D, num_heads, Dh), (1, 0, 2)).astype(jnp.bfloat16)


def _pack_heads_out(w, num_heads):     # (D, D) -> (H, Dh, D) bf16 (row blocks)
    D = w.shape[0]
    Dh = D // num_heads
    return w.reshape(num_heads, Dh, D).astype(jnp.bfloat16)


def _pack_bias_heads(b, num_heads):    # (D,) -> (H, 1, Dh) f32
    D = b.shape[0]
    Dh = D // num_heads
    return b.reshape(num_heads, 1, Dh).astype(jnp.float32)


def _pack_attn(ap, num_heads, prefix=""):
    D = ap["wq"].shape[0]
    return {
        prefix + "wq": _pack_heads_in(ap["wq"], num_heads),
        prefix + "wk": _pack_heads_in(ap["wk"], num_heads),
        prefix + "wv": _pack_heads_in(ap["wv"], num_heads),
        prefix + "bq": _pack_bias_heads(ap["bq"], num_heads),
        prefix + "bk": _pack_bias_heads(ap["bk"], num_heads),
        prefix + "bv": _pack_bias_heads(ap["bv"], num_heads),
        prefix + "wo": _pack_heads_out(ap["wo"], num_heads),
        prefix + "bo": ap["bo"].reshape(1, D).astype(jnp.float32),
    }


def _pack_ffn(fp):
    D = fp["w2"].shape[1]
    Fh = fp["w1"].shape[1]
    return {
        "w1": fp["w1"].astype(jnp.bfloat16), "b1": fp["b1"].reshape(1, Fh),
        "w2": fp["w2"].astype(jnp.bfloat16), "b2": fp["b2"].reshape(1, D),
    }


def pack_encoder_params(p, num_heads):
    D = p["emb"].shape[1]
    pk = {"emb": p["emb"]}
    pk.update(_pack_attn(p["attn"], num_heads))
    pk.update(_pack_ffn(p["ffn"]))
    for n in ("ln1_g", "ln1_b", "ln2_g", "ln2_b"):
        pk[n] = p[n].reshape(1, D)
    return pk


def pack_decoder_params(p, num_heads):
    D = p["emb"].shape[1]
    V = p["w_out"].shape[1]
    Vp = ((V + 127) // 128) * 128
    pk = {"emb": p["emb"], "vocab": V}
    pk.update(_pack_attn(p["self_attn"], num_heads, "s_"))
    pk.update(_pack_attn(p["cross_attn"], num_heads, "c_"))
    pk.update(_pack_ffn(p["ffn"]))
    for n in ("ln1_g", "ln1_b", "ln2_g", "ln2_b", "ln3_g", "ln3_b"):
        pk[n] = p[n].reshape(1, D)
    pk["w_out_p"] = (jnp.zeros((D, Vp), jnp.bfloat16)
                     .at[:, :V].set(p["w_out"].astype(jnp.bfloat16)))
    pk["b_out_p"] = (jnp.zeros((1, Vp), jnp.float32)
                     .at[:, :V].set(p["b_out"].reshape(1, V)))
    return pk


# ---------------------------------------------------------------------------
# Model glue (embedding gather + cached positional encoding stay in JAX)
# ---------------------------------------------------------------------------
@functools.lru_cache(maxsize=None)
def _positional_encoding_np(L, D):
    pos = np.arange(L, dtype=np.float32)[:, None]
    i = np.arange(0, D, 2, dtype=np.float32)[None, :]
    angle = pos / np.power(10000.0, i / D)
    pe = np.zeros((L, D), np.float32)
    pe[:, 0::2] = np.sin(angle)
    pe[:, 1::2] = np.cos(angle)
    return pe


def embed(tokens, emb_table):
    B, L = tokens.shape
    D = emb_table.shape[1]
    x = jnp.take(emb_table, tokens, axis=0) * math.sqrt(D)
    return x + jnp.asarray(_positional_encoding_np(L, D))[None]


class Encoder:
    def __init__(self, params, num_heads):
        self.p = pack_encoder_params(params, num_heads)   # packed once
        self.h = num_heads

    def __call__(self, X_enc, *args):
        x = embed(X_enc, self.p["emb"])
        return encoder_block(x, self.p, self.h)            # (B, L_enc, D) f32


class Decoder:
    def __init__(self, params, num_heads):
        self.p = pack_decoder_params(params, num_heads)    # packed once
        self.h = num_heads

    def init_states(self, encoder_out, *args):
        return encoder_out

    def __call__(self, X_dec, states, *args):
        p = self.p
        enc_out = states
        B, L = X_dec.shape
        D = p["emb"].shape[1]
        x = embed(X_dec, p["emb"])
        x = decoder_block(x, enc_out, p, self.h)            # (B, L_dec, D) bf16
        V = p["vocab"]
        logits = output_head(x.reshape(B * L, D), p["w_out_p"], p["b_out_p"], V)
        return logits.reshape(B, L, V), states


class EncoderDecoder:
    """Mirrors the PyTorch EncoderDecoder.forward semantics."""

    def __init__(self, encoder, decoder, lr=0.001):
        self.encoder = encoder
        self.decoder = decoder
        self.lr = lr

    def forward(self, X_enc, X_dec, *args):
        encoder_out = self.encoder(X_enc, *args)
        states = self.decoder.init_states(encoder_out, *args)
        output = self.decoder(X_dec, states, *args)
        return output[0]


# ---------------------------------------------------------------------------
# Deterministic parameter init (raw, un-packed layout)
# ---------------------------------------------------------------------------
def _mha_params(key, D):
    ks = jax.random.split(key, 4)

    def lin(k):
        return jax.random.normal(k, (D, D), jnp.float32) * 0.05

    return {
        "wq": lin(ks[0]), "bq": jnp.zeros((D,), jnp.float32),
        "wk": lin(ks[1]), "bk": jnp.zeros((D,), jnp.float32),
        "wv": lin(ks[2]), "bv": jnp.zeros((D,), jnp.float32),
        "wo": lin(ks[3]), "bo": jnp.zeros((D,), jnp.float32),
    }


def _ffn_params(key, D, H):
    k1, k2 = jax.random.split(key)
    return {
        "w1": jax.random.normal(k1, (D, H), jnp.float32) * 0.05,
        "b1": jnp.zeros((H,), jnp.float32),
        "w2": jax.random.normal(k2, (H, D), jnp.float32) * 0.05,
        "b2": jnp.zeros((D,), jnp.float32),
    }


def init_all_params(key, vocab_src, vocab_tgt, D, ffn_hidden):
    ks = jax.random.split(key, 8)
    enc = {
        "emb": jax.random.normal(ks[0], (vocab_src, D), jnp.float32) * 0.05,
        "attn": _mha_params(ks[1], D),
        "ffn": _ffn_params(ks[2], D, ffn_hidden),
        "ln1_g": jnp.ones((D,), jnp.float32), "ln1_b": jnp.zeros((D,), jnp.float32),
        "ln2_g": jnp.ones((D,), jnp.float32), "ln2_b": jnp.zeros((D,), jnp.float32),
    }
    dec = {
        "emb": jax.random.normal(ks[3], (vocab_tgt, D), jnp.float32) * 0.05,
        "self_attn": _mha_params(ks[4], D),
        "cross_attn": _mha_params(ks[5], D),
        "ffn": _ffn_params(ks[6], D, ffn_hidden),
        "ln1_g": jnp.ones((D,), jnp.float32), "ln1_b": jnp.zeros((D,), jnp.float32),
        "ln2_g": jnp.ones((D,), jnp.float32), "ln2_b": jnp.zeros((D,), jnp.float32),
        "ln3_g": jnp.ones((D,), jnp.float32), "ln3_b": jnp.zeros((D,), jnp.float32),
        "w_out": jax.random.normal(ks[7], (D, vocab_tgt), jnp.float32) * 0.05,
        "b_out": jnp.zeros((vocab_tgt,), jnp.float32),
    }
    return enc, dec


# ---------------------------------------------------------------------------
if __name__ == "__main__":
    B, L_ENC, L_DEC = 2, 8, 8
    D_MODEL, N_HEADS, FFN_H = 32, 4, 64
    VOCAB_SRC, VOCAB_TGT = 40, 40

    key = jax.random.PRNGKey(0)
    k_param, k_src, k_tgt = jax.random.split(key, 3)

    enc_params, dec_params = init_all_params(
        k_param, VOCAB_SRC, VOCAB_TGT, D_MODEL, FFN_H)

    X_enc = jax.random.randint(k_src, (B, L_ENC), 0, VOCAB_SRC, dtype=jnp.int32)
    X_dec = jax.random.randint(k_tgt, (B, L_DEC), 0, VOCAB_TGT, dtype=jnp.int32)

    model = EncoderDecoder(Encoder(enc_params, N_HEADS),
                           Decoder(dec_params, N_HEADS), lr=0.001)

    out = model.forward(X_enc, X_dec)
    out = jax.block_until_ready(out)

    assert out.shape == (B, L_DEC, VOCAB_TGT)
    assert bool(jnp.all(jnp.isfinite(out)))
    print("KERNEL_OK")
</pallas_src>

<mosaic_0001>
module attributes {stable_mosaic.version = 11 : i64} {
  func.func @_encoder_block_kernel(%arg0: i32, %arg1: memref<1x8x32xf32, #tpu.memory_space<vmem>>, %arg2: memref<4x32x8xbf16, #tpu.memory_space<vmem>>, %arg3: memref<4x32x8xbf16, #tpu.memory_space<vmem>>, %arg4: memref<4x32x8xbf16, #tpu.memory_space<vmem>>, %arg5: memref<4x1x8xf32, #tpu.memory_space<vmem>>, %arg6: memref<4x1x8xf32, #tpu.memory_space<vmem>>, %arg7: memref<4x1x8xf32, #tpu.memory_space<vmem>>, %arg8: memref<4x8x32xbf16, #tpu.memory_space<vmem>>, %arg9: memref<1x32xf32, #tpu.memory_space<vmem>>, %arg10: memref<1x32xf32, #tpu.memory_space<vmem>>, %arg11: memref<1x32xf32, #tpu.memory_space<vmem>>, %arg12: memref<32x64xbf16, #tpu.memory_space<vmem>>, %arg13: memref<1x64xf32, #tpu.memory_space<vmem>>, %arg14: memref<64x32xbf16, #tpu.memory_space<vmem>>, %arg15: memref<1x32xf32, #tpu.memory_space<vmem>>, %arg16: memref<1x32xf32, #tpu.memory_space<vmem>>, %arg17: memref<1x32xf32, #tpu.memory_space<vmem>>, %arg18: memref<1x8x32xf32, #tpu.memory_space<vmem>>) attributes {dimension_semantics = [#tpu.dimension_semantics<parallel>], iteration_bounds = array<i64: 2>, scalar_prefetch = 0 : i64, scratch_operands = 0 : i64, tpu.core_type = #tpu.core_type<tc>, window_params = [{transform_indices = @transform_0, window_bounds = array<i64: 1, 8, 32>}, {pipeline_mode = #tpu.pipeline_mode<synchronous>, transform_indices = @transform_1, window_bounds = array<i64: 4, 32, 8>}, {pipeline_mode = #tpu.pipeline_mode<synchronous>, transform_indices = @transform_2, window_bounds = array<i64: 4, 32, 8>}, {pipeline_mode = #tpu.pipeline_mode<synchronous>, transform_indices = @transform_3, window_bounds = array<i64: 4, 32, 8>}, {pipeline_mode = #tpu.pipeline_mode<synchronous>, transform_indices = @transform_4, window_bounds = array<i64: 4, 1, 8>}, {pipeline_mode = #tpu.pipeline_mode<synchronous>, transform_indices = @transform_5, window_bounds = array<i64: 4, 1, 8>}, {pipeline_mode = #tpu.pipeline_mode<synchronous>, transform_indices = @transform_6, window_bounds = array<i64: 4, 1, 8>}, {pipeline_mode = #tpu.pipeline_mode<synchronous>, transform_indices = @transform_7, window_bounds = array<i64: 4, 8, 32>}, {pipeline_mode = #tpu.pipeline_mode<synchronous>, transform_indices = @transform_8, window_bounds = array<i64: 1, 32>}, {pipeline_mode = #tpu.pipeline_mode<synchronous>, transform_indices = @transform_9, window_bounds = array<i64: 1, 32>}, {pipeline_mode = #tpu.pipeline_mode<synchronous>, transform_indices = @transform_10, window_bounds = array<i64: 1, 32>}, {pipeline_mode = #tpu.pipeline_mode<synchronous>, transform_indices = @transform_11, window_bounds = array<i64: 32, 64>}, {pipeline_mode = #tpu.pipeline_mode<synchronous>, transform_indices = @transform_12, window_bounds = array<i64: 1, 64>}, {pipeline_mode = #tpu.pipeline_mode<synchronous>, transform_indices = @transform_13, window_bounds = array<i64: 64, 32>}, {pipeline_mode = #tpu.pipeline_mode<synchronous>, transform_indices = @transform_14, window_bounds = array<i64: 1, 32>}, {pipeline_mode = #tpu.pipeline_mode<synchronous>, transform_indices = @transform_15, window_bounds = array<i64: 1, 32>}, {pipeline_mode = #tpu.pipeline_mode<synchronous>, transform_indices = @transform_16, window_bounds = array<i64: 1, 32>}, {transform_indices = @transform_17, window_bounds = array<i64: 1, 8, 32>}]} {
    %c0 = arith.constant 0 : index
    %c0_0 = arith.constant 0 : index
    %c0_1 = arith.constant 0 : index
    %0 = vector.load %arg1[%c0, %c0_0, %c0_1] : memref<1x8x32xf32, #tpu.memory_space<vmem>>, vector<1x8x32xf32>
    %1 = vector.shape_cast %0 : vector<1x8x32xf32> to vector<8x32xf32>
    %c0_2 = arith.constant 0 : index
    %c0_3 = arith.constant 0 : index
    %c0_4 = arith.constant 0 : index
    %2 = vector.load %arg2[%c0_2, %c0_3, %c0_4] : memref<4x32x8xbf16, #tpu.memory_space<vmem>>, vector<4x32x8xbf16>
    %c0_5 = arith.constant 0 : index
    %c0_6 = arith.constant 0 : index
    %c0_7 = arith.constant 0 : index
    %3 = vector.load %arg3[%c0_5, %c0_6, %c0_7] : memref<4x32x8xbf16, #tpu.memory_space<vmem>>, vector<4x32x8xbf16>
    %c0_8 = arith.constant 0 : index
    %c0_9 = arith.constant 0 : index
    %c0_10 = arith.constant 0 : index
    %4 = vector.load %arg4[%c0_8, %c0_9, %c0_10] : memref<4x32x8xbf16, #tpu.memory_space<vmem>>, vector<4x32x8xbf16>
    %c0_11 = arith.constant 0 : index
    %c0_12 = arith.constant 0 : index
    %c0_13 = arith.constant 0 : index
    %5 = vector.load %arg5[%c0_11, %c0_12, %c0_13] : memref<4x1x8xf32, #tpu.memory_space<vmem>>, vector<4x1x8xf32>
    %c0_14 = arith.constant 0 : index
    %c0_15 = arith.constant 0 : index
    %c0_16 = arith.constant 0 : index
    %6 = vector.load %arg6[%c0_14, %c0_15, %c0_16] : memref<4x1x8xf32, #tpu.memory_space<vmem>>, vector<4x1x8xf32>
    %c0_17 = arith.constant 0 : index
    %c0_18 = arith.constant 0 : index
    %c0_19 = arith.constant 0 : index
    %7 = vector.load %arg7[%c0_17, %c0_18, %c0_19] : memref<4x1x8xf32, #tpu.memory_space<vmem>>, vector<4x1x8xf32>
    %c0_20 = arith.constant 0 : index
    %c0_21 = arith.constant 0 : index
    %c0_22 = arith.constant 0 : index
    %8 = vector.load %arg8[%c0_20, %c0_21, %c0_22] : memref<4x8x32xbf16, #tpu.memory_space<vmem>>, vector<4x8x32xbf16>
    %c0_23 = arith.constant 0 : index
    %c0_24 = arith.constant 0 : index
    %9 = vector.load %arg9[%c0_23, %c0_24] : memref<1x32xf32, #tpu.memory_space<vmem>>, vector<1x32xf32>
    %10 = arith.truncf %1 : vector<8x32xf32> to vector<8x32xbf16>
    %11 = vector.shape_cast %10 : vector<8x32xbf16> to vector<1x8x32xbf16>
    %12 = vector.shape_cast %11 : vector<1x8x32xbf16> to vector<1x8x32xbf16>
    %13 = vector.broadcast %12 : vector<1x8x32xbf16> to vector<4x8x32xbf16>
    "tpu.trace_start"() <{level = 10 : i32, message = "hld,hdk->hlk"}> : () -> ()
    %cst = arith.constant dense<0.000000e+00> : vector<4x8x8xf32>
    %14 = tpu.matmul %13, %2, %cst {dimension_numbers = #tpu.dot_dimension_numbers<[2], [1], [1], [2], [0, 0, 0, 1, 1, 2], [0], [0]>} : vector<4x8x32xbf16>, vector<4x32x8xbf16>, vector<4x8x8xf32> -> vector<4x8x8xf32>
    "tpu.trace_stop"() : () -> ()
    %15 = vector.broadcast %5 : vector<4x1x8xf32> to vector<4x8x8xf32>
    %16 = arith.addf %14, %15 : vector<4x8x8xf32>
    "tpu.trace_start"() <{level = 10 : i32, message = "hld,hdk->hlk"}> : () -> ()
    %cst_25 = arith.constant dense<0.000000e+00> : vector<4x8x8xf32>
    %17 = tpu.matmul %13, %3, %cst_25 {dimension_numbers = #tpu.dot_dimension_numbers<[2], [1], [1], [2], [0, 0, 0, 1, 1, 2], [0], [0]>} : vector<4x8x32xbf16>, vector<4x32x8xbf16>, vector<4x8x8xf32> -> vector<4x8x8xf32>
    "tpu.trace_stop"() : () -> ()
    %18 = vector.broadcast %6 : vector<4x1x8xf32> to vector<4x8x8xf32>
    %19 = arith.addf %17, %18 : vector<4x8x8xf32>
    "tpu.trace_start"() <{level = 10 : i32, message = "hld,hdk->hlk"}> : () -> ()
    %cst_26 = arith.constant dense<0.000000e+00> : vector<4x8x8xf32>
    %20 = tpu.matmul %13, %4, %cst_26 {dimension_numbers = #tpu.dot_dimension_numbers<[2], [1], [1], [2], [0, 0, 0, 1, 1, 2], [0], [0]>} : vector<4x8x32xbf16>, vector<4x32x8xbf16>, vector<4x8x8xf32> -> vector<4x8x8xf32>
    "tpu.trace_stop"() : () -> ()
    %21 = vector.broadcast %7 : vector<4x1x8xf32> to vector<4x8x8xf32>
    %22 = arith.addf %20, %21 : vector<4x8x8xf32>
    %cst_27 = arith.constant 0.353553385 : f32
    %23 = vector.broadcast %cst_27 : f32 to vector<4x8x8xf32>
    %24 = arith.mulf %16, %23 : vector<4x8x8xf32>
    %25 = arith.truncf %24 : vector<4x8x8xf32> to vector<4x8x8xbf16>
    %26 = arith.truncf %19 : vector<4x8x8xf32> to vector<4x8x8xbf16>
    "tpu.trace_start"() <{level = 10 : i32, message = "hqd,hkd->hqk"}> : () -> ()
    %cst_28 = arith.constant dense<0.000000e+00> : vector<4x8x8xf32>
    %27 = tpu.matmul %25, %26, %cst_28 {dimension_numbers = #tpu.dot_dimension_numbers<[2], [2], [1], [1], [0, 0, 0, 1, 1, 1], [0], [0]>} : vector<4x8x8xbf16>, vector<4x8x8xbf16>, vector<4x8x8xf32> -> vector<4x8x8xf32>
    "tpu.trace_stop"() : () -> ()
    %cst_29 = arith.constant dense<0xFF800000> : vector<4x8xf32>
    %28 = vector.multi_reduction <maximumf>, %27, %cst_29 [2] : vector<4x8x8xf32> to vector<4x8xf32>
    %29 = vector.shape_cast %28 : vector<4x8xf32> to vector<4x8x1xf32>
    %30 = vector.broadcast %29 : vector<4x8x1xf32> to vector<4x8x8xf32>
    %31 = arith.subf %27, %30 : vector<4x8x8xf32>
    %32 = math.exp %31 : vector<4x8x8xf32>
    %cst_30 = arith.constant dense<0.000000e+00> : vector<4x8xf32>
    %33 = vector.multi_reduction <add>, %32, %cst_30 [2] : vector<4x8x8xf32> to vector<4x8xf32>
    %34 = vector.shape_cast %33 : vector<4x8xf32> to vector<4x8x1xf32>
    %35 = vector.broadcast %34 : vector<4x8x1xf32> to vector<4x8x8xf32>
    %36 = arith.divf %32, %35 : vector<4x8x8xf32>
    %37 = arith.truncf %36 : vector<4x8x8xf32> to vector<4x8x8xbf16>
    %38 = arith.truncf %22 : vector<4x8x8xf32> to vector<4x8x8xbf16>
    "tpu.trace_start"() <{level = 10 : i32, message = "hqk,hkd->hqd"}> : () -> ()
    %cst_31 = arith.constant dense<0.000000e+00> : vector<4x8x8xf32>
    %39 = tpu.matmul %37, %38, %cst_31 {dimension_numbers = #tpu.dot_dimension_numbers<[2], [1], [1], [2], [0, 0, 0, 1, 1, 2], [0], [0]>} : vector<4x8x8xbf16>, vector<4x8x8xbf16>, vector<4x8x8xf32> -> vector<4x8x8xf32>
    "tpu.trace_stop"() : () -> ()
    %40 = arith.truncf %39 : vector<4x8x8xf32> to vector<4x8x8xbf16>
    "tpu.trace_start"() <{level = 10 : i32, message = "hqd,hdk->hqk"}> : () -> ()
    %cst_32 = arith.constant dense<0.000000e+00> : vector<4x8x32xf32>
    %41 = tpu.matmul %40, %8, %cst_32 {dimension_numbers = #tpu.dot_dimension_numbers<[2], [1], [1], [2], [0, 0, 0, 1, 1, 2], [0], [0]>} : vector<4x8x8xbf16>, vector<4x8x32xbf16>, vector<4x8x32xf32> -> vector<4x8x32xf32>
    "tpu.trace_stop"() : () -> ()
    %cst_33 = arith.constant dense<0.000000e+00> : vector<8x32xf32>
    %42 = vector.multi_reduction <add>, %41, %cst_33 [0] : vector<4x8x32xf32> to vector<8x32xf32>
    %43 = vector.broadcast %9 : vector<1x32xf32> to vector<8x32xf32>
    %44 = arith.addf %42, %43 : vector<8x32xf32>
    %45 = arith.addf %1, %44 : vector<8x32xf32>
    %c0_34 = arith.constant 0 : index
    %c0_35 = arith.constant 0 : index
    %46 = vector.load %arg10[%c0_34, %c0_35] : memref<1x32xf32, #tpu.memory_space<vmem>>, vector<1x32xf32>
    %c0_36 = arith.constant 0 : index
    %c0_37 = arith.constant 0 : index
    %47 = vector.load %arg11[%c0_36, %c0_37] : memref<1x32xf32, #tpu.memory_space<vmem>>, vector<1x32xf32>
    %cst_38 = arith.constant dense<0.000000e+00> : vector<8xf32>
    %48 = vector.multi_reduction <add>, %45, %cst_38 [1] : vector<8x32xf32> to vector<8xf32>
    %49 = vector.shape_cast %48 : vector<8xf32> to vector<8x1xf32>
    %cst_39 = arith.constant 3.200000e+01 : f32
    %50 = vector.broadcast %cst_39 : f32 to vector<8x1xf32>
    %51 = arith.divf %49, %50 : vector<8x1xf32>
    %52 = vector.broadcast %51 : vector<8x1xf32> to vector<8x32xf32>
    %53 = arith.subf %45, %52 : vector<8x32xf32>
    %54 = vector.broadcast %51 : vector<8x1xf32> to vector<8x32xf32>
    %55 = arith.subf %45, %54 : vector<8x32xf32>
    %56 = arith.mulf %53, %55 : vector<8x32xf32>
    %cst_40 = arith.constant dense<0.000000e+00> : vector<8xf32>
    %57 = vector.multi_reduction <add>, %56, %cst_40 [1] : vector<8x32xf32> to vector<8xf32>
    %58 = vector.shape_cast %57 : vector<8xf32> to vector<8x1xf32>
    %cst_41 = arith.constant 3.200000e+01 : f32
    %59 = vector.broadcast %cst_41 : f32 to vector<8x1xf32>
    %60 = arith.divf %58, %59 : vector<8x1xf32>
    %61 = vector.broadcast %51 : vector<8x1xf32> to vector<8x32xf32>
    %62 = arith.subf %45, %61 : vector<8x32xf32>
    %cst_42 = arith.constant 9.99999974E-6 : f32
    %63 = vector.broadcast %cst_42 : f32 to vector<8x1xf32>
    %64 = arith.addf %60, %63 : vector<8x1xf32>
    %65 = math.rsqrt %64 : vector<8x1xf32>
    %66 = vector.broadcast %65 : vector<8x1xf32> to vector<8x32xf32>
    %67 = arith.mulf %62, %66 : vector<8x32xf32>
    %68 = vector.broadcast %46 : vector<1x32xf32> to vector<8x32xf32>
    %69 = arith.mulf %67, %68 : vector<8x32xf32>
    %70 = vector.broadcast %47 : vector<1x32xf32> to vector<8x32xf32>
    %71 = arith.addf %69, %70 : vector<8x32xf32>
    %c0_43 = arith.constant 0 : index
    %c0_44 = arith.constant 0 : index
    %72 = vector.load %arg12[%c0_43, %c0_44] : memref<32x64xbf16, #tpu.memory_space<vmem>>, vector<32x64xbf16>
    %73 = arith.truncf %71 : vector<8x32xf32> to vector<8x32xbf16>
    %cst_45 = arith.constant dense<0.000000e+00> : vector<8x64xf32>
    %74 = tpu.matmul %73, %72, %cst_45 {dimension_numbers = #tpu.dot_dimension_numbers<[1], [0], [0], [1], [0, 0, 1, 1], [], []>} : vector<8x32xbf16>, vector<32x64xbf16>, vector<8x64xf32> -> vector<8x64xf32>
    %c0_46 = arith.constant 0 : index
    %c0_47 = arith.constant 0 : index
    %75 = vector.load %arg13[%c0_46, %c0_47] : memref<1x64xf32, #tpu.memory_space<vmem>>, vector<1x64xf32>
    %76 = vector.broadcast %75 : vector<1x64xf32> to vector<8x64xf32>
    %77 = arith.addf %74, %76 : vector<8x64xf32>
    %cst_48 = arith.constant 0.000000e+00 : f32
    %78 = vector.broadcast %cst_48 : f32 to vector<8x64xf32>
    %79 = arith.maximumf %77, %78 : vector<8x64xf32>
    %c0_49 = arith.constant 0 : index
    %c0_50 = arith.constant 0 : index
    %80 = vector.load %arg14[%c0_49, %c0_50] : memref<64x32xbf16, #tpu.memory_space<vmem>>, vector<64x32xbf16>
    %81 = arith.truncf %79 : vector<8x64xf32> to vector<8x64xbf16>
    %cst_51 = arith.constant dense<0.000000e+00> : vector<8x32xf32>
    %82 = tpu.matmul %81, %80, %cst_51 {dimension_numbers = #tpu.dot_dimension_numbers<[1], [0], [0], [1], [0, 0, 1, 1], [], []>} : vector<8x64xbf16>, vector<64x32xbf16>, vector<8x32xf32> -> vector<8x32xf32>
    %c0_52 = arith.constant 0 : index
    %c0_53 = arith.constant 0 : index
    %83 = vector.load %arg15[%c0_52, %c0_53] : memref<1x32xf32, #tpu.memory_space<vmem>>, vector<1x32xf32>
    %84 = vector.broadcast %83 : vector<1x32xf32> to vector<8x32xf32>
    %85 = arith.addf %82, %84 : vector<8x32xf32>
    %86 = arith.addf %71, %85 : vector<8x32xf32>
    %c0_54 = arith.constant 0 : index
    %c0_55 = arith.constant 0 : index
    %87 = vector.load %arg16[%c0_54, %c0_55] : memref<1x32xf32, #tpu.memory_space<vmem>>, vector<1x32xf32>
    %c0_56 = arith.constant 0 : index
    %c0_57 = arith.constant 0 : index
    %88 = vector.load %arg17[%c0_56, %c0_57] : memref<1x32xf32, #tpu.memory_space<vmem>>, vector<1x32xf32>
    %cst_58 = arith.constant dense<0.000000e+00> : vector<8xf32>
    %89 = vector.multi_reduction <add>, %86, %cst_58 [1] : vector<8x32xf32> to vector<8xf32>
    %90 = vector.shape_cast %89 : vector<8xf32> to vector<8x1xf32>
    %cst_59 = arith.constant 3.200000e+01 : f32
    %91 = vector.broadcast %cst_59 : f32 to vector<8x1xf32>
    %92 = arith.divf %90, %91 : vector<8x1xf32>
    %93 = vector.broadcast %92 : vector<8x1xf32> to vector<8x32xf32>
    %94 = arith.subf %86, %93 : vector<8x32xf32>
    %95 = vector.broadcast %92 : vector<8x1xf32> to vector<8x32xf32>
    %96 = arith.subf %86, %95 : vector<8x32xf32>
    %97 = arith.mulf %94, %96 : vector<8x32xf32>
    %cst_60 = arith.constant dense<0.000000e+00> : vector<8xf32>
    %98 = vector.multi_reduction <add>, %97, %cst_60 [1] : vector<8x32xf32> to vector<8xf32>
    %99 = vector.shape_cast %98 : vector<8xf32> to vector<8x1xf32>
    %cst_61 = arith.constant 3.200000e+01 : f32
    %100 = vector.broadcast %cst_61 : f32 to vector<8x1xf32>
    %101 = arith.divf %99, %100 : vector<8x1xf32>
    %102 = vector.broadcast %92 : vector<8x1xf32> to vector<8x32xf32>
    %103 = arith.subf %86, %102 : vector<8x32xf32>
    %cst_62 = arith.constant 9.99999974E-6 : f32
    %104 = vector.broadcast %cst_62 : f32 to vector<8x1xf32>
    %105 = arith.addf %101, %104 : vector<8x1xf32>
    %106 = math.rsqrt %105 : vector<8x1xf32>
    %107 = vector.broadcast %106 : vector<8x1xf32> to vector<8x32xf32>
    %108 = arith.mulf %103, %107 : vector<8x32xf32>
    %109 = vector.broadcast %87 : vector<1x32xf32> to vector<8x32xf32>
    %110 = arith.mulf %108, %109 : vector<8x32xf32>
    %111 = vector.broadcast %88 : vector<1x32xf32> to vector<8x32xf32>
    %112 = arith.addf %110, %111 : vector<8x32xf32>
    %c0_63 = arith.constant 0 : index
    %c0_64 = arith.constant 0 : index
    %c0_65 = arith.constant 0 : index
    %113 = vector.load %arg18[%c0_63, %c0_64, %c0_65] : memref<1x8x32xf32, #tpu.memory_space<vmem>>, vector<1x8x32xf32>
    %114 = vector.shape_cast %113 : vector<1x8x32xf32> to vector<8x32xf32>
    %115 = vector.shape_cast %112 : vector<8x32xf32> to vector<1x8x32xf32>
    tpu.vector_store %arg18[%c0_63, %c0_64, %c0_65], %115 {strides = array<i32>} : memref<1x8x32xf32, #tpu.memory_space<vmem>>, vector<1x8x32xf32>,
    return
  }
  func.func @transform_0(%arg0: i32) -> (i32, i32, i32) {
    %c0_i32 = arith.constant 0 : i32
    %c0_i32_0 = arith.constant 0 : i32
    %c0_i32_1 = arith.constant 0 : i32
    return %arg0, %c0_i32, %c0_i32_0 : i32, i32, i32
  }
  func.func @transform_1(%arg0: i32) -> (i32, i32, i32) {
    %c0_i32 = arith.constant 0 : i32
    %c0_i32_0 = arith.constant 0 : i32
    %c0_i32_1 = arith.constant 0 : i32
    %c0_i32_2 = arith.constant 0 : i32
    return %c0_i32, %c0_i32_0, %c0_i32_1 : i32, i32, i32
  }
  func.func @transform_2(%arg0: i32) -> (i32, i32, i32) {
    %c0_i32 = arith.constant 0 : i32
    %c0_i32_0 = arith.constant 0 : i32
    %c0_i32_1 = arith.constant 0 : i32
    %c0_i32_2 = arith.constant 0 : i32
    return %c0_i32, %c0_i32_0, %c0_i32_1 : i32, i32, i32
  }
  func.func @transform_3(%arg0: i32) -> (i32, i32, i32) {
    %c0_i32 = arith.constant 0 : i32
    %c0_i32_0 = arith.constant 0 : i32
    %c0_i32_1 = arith.constant 0 : i32
    %c0_i32_2 = arith.constant 0 : i32
    return %c0_i32, %c0_i32_0, %c0_i32_1 : i32, i32, i32
  }
  func.func @transform_4(%arg0: i32) -> (i32, i32, i32) {
    %c0_i32 = arith.constant 0 : i32
    %c0_i32_0 = arith.constant 0 : i32
    %c0_i32_1 = arith.constant 0 : i32
    %c0_i32_2 = arith.constant 0 : i32
    return %c0_i32, %c0_i32_0, %c0_i32_1 : i32, i32, i32
  }
  func.func @transform_5(%arg0: i32) -> (i32, i32, i32) {
    %c0_i32 = arith.constant 0 : i32
    %c0_i32_0 = arith.constant 0 : i32
    %c0_i32_1 = arith.constant 0 : i32
    %c0_i32_2 = arith.constant 0 : i32
    return %c0_i32, %c0_i32_0, %c0_i32_1 : i32, i32, i32
  }
  func.func @transform_6(%arg0: i32) -> (i32, i32, i32) {
    %c0_i32 = arith.constant 0 : i32
    %c0_i32_0 = arith.constant 0 : i32
    %c0_i32_1 = arith.constant 0 : i32
    %c0_i32_2 = arith.constant 0 : i32
    return %c0_i32, %c0_i32_0, %c0_i32_1 : i32, i32, i32
  }
  func.func @transform_7(%arg0: i32) -> (i32, i32, i32) {
    %c0_i32 = arith.constant 0 : i32
    %c0_i32_0 = arith.constant 0 : i32
    %c0_i32_1 = arith.constant 0 : i32
    %c0_i32_2 = arith.constant 0 : i32
    return %c0_i32, %c0_i32_0, %c0_i32_1 : i32, i32, i32
  }
  func.func @transform_8(%arg0: i32) -> (i32, i32) {
    %c0_i32 = arith.constant 0 : i32
    %c0_i32_0 = arith.constant 0 : i32
    %c0_i32_1 = arith.constant 0 : i32
    return %c0_i32, %c0_i32_0 : i32, i32
  }
  func.func @transform_9(%arg0: i32) -> (i32, i32) {
    %c0_i32 = arith.constant 0 : i32
    %c0_i32_0 = arith.constant 0 : i32
    %c0_i32_1 = arith.constant 0 : i32
    return %c0_i32, %c0_i32_0 : i32, i32
  }
  func.func @transform_10(%arg0: i32) -> (i32, i32) {
    %c0_i32 = arith.constant 0 : i32
    %c0_i32_0 = arith.constant 0 : i32
    %c0_i32_1 = arith.constant 0 : i32
    return %c0_i32, %c0_i32_0 : i32, i32
  }
  func.func @transform_11(%arg0: i32) -> (i32, i32) {
    %c0_i32 = arith.constant 0 : i32
    %c0_i32_0 = arith.constant 0 : i32
    %c0_i32_1 = arith.constant 0 : i32
    return %c0_i32, %c0_i32_0 : i32, i32
  }
  func.func @transform_12(%arg0: i32) -> (i32, i32) {
    %c0_i32 = arith.constant 0 : i32
    %c0_i32_0 = arith.constant 0 : i32
    %c0_i32_1 = arith.constant 0 : i32
    return %c0_i32, %c0_i32_0 : i32, i32
  }
  func.func @transform_13(%arg0: i32) -> (i32, i32) {
    %c0_i32 = arith.constant 0 : i32
    %c0_i32_0 = arith.constant 0 : i32
    %c0_i32_1 = arith.constant 0 : i32
    return %c0_i32, %c0_i32_0 : i32, i32
  }
  func.func @transform_14(%arg0: i32) -> (i32, i32) {
    %c0_i32 = arith.constant 0 : i32
    %c0_i32_0 = arith.constant 0 : i32
    %c0_i32_1 = arith.constant 0 : i32
    return %c0_i32, %c0_i32_0 : i32, i32
  }
  func.func @transform_15(%arg0: i32) -> (i32, i32) {
    %c0_i32 = arith.constant 0 : i32
    %c0_i32_0 = arith.constant 0 : i32
    %c0_i32_1 = arith.constant 0 : i32
    return %c0_i32, %c0_i32_0 : i32, i32
  }
  func.func @transform_16(%arg0: i32) -> (i32, i32) {
    %c0_i32 = arith.constant 0 : i32
    %c0_i32_0 = arith.constant 0 : i32
    %c0_i32_1 = arith.constant 0 : i32
    return %c0_i32, %c0_i32_0 : i32, i32
  }
  func.func @transform_17(%arg0: i32) -> (i32, i32, i32) {
    %c0_i32 = arith.constant 0 : i32
    %c0_i32_0 = arith.constant 0 : i32
    %c0_i32_1 = arith.constant 0 : i32
    return %arg0, %c0_i32, %c0_i32_0 : i32, i32, i32
  }
}

</mosaic_0001>

<bundles_post_ra>
// kernel: tpu_custom_call.1
= control target key start
LH: loop header
LB: loop body
LE: loop exit
PB: predicated region body
PF: predicated region fallthrough
CT: control target
= control target key end

     0   :  { %s3241_s0 = inlined_call_operand.vmem [shape: f32[2,8,32], index: 0, kind: input, shape index: {}]   ;;  %s3242_s1 = inlined_call_operand.vmem [shape: bf16[4,32,8], index: 1, kind: input, shape index: {}]   ;;  %s3243_s2 = inlined_call_operand.vmem [shape: bf16[4,32,8], index: 2, kind: input, shape index: {}]   ;;  %s3244_s3 = inlined_call_operand.vmem [shape: bf16[4,32,8], index: 3, kind: input, shape index: {}]   ;;  %s3245_s4 = inlined_call_operand.vmem [shape: f32[4,1,8], index: 4, kind: input, shape index: {}]   ;;  %s3246_s5 = inlined_call_operand.vmem [shape: f32[4,1,8], index: 5, kind: input, shape index: {}]   ;;  %s3247_s6 = inlined_call_operand.vmem [shape: f32[4,1,8], index: 6, kind: input, shape index: {}]   ;;  %s3248_s7 = inlined_call_operand.vmem [shape: bf16[4,8,32], index: 7, kind: input, shape index: {}]   ;;  %s3249_s8 = inlined_call_operand.vmem [shape: f32[1,32], index: 8, kind: input, shape index: {}]   ;;  %s3250_s9 = inlined_call_operand.vmem [shape: f32[1,32], index: 9, kind: input, shape index: {}]   ;;  %s3251_s10 = inlined_call_operand.vmem [shape: f32[1,32], index: 10, kind: input, shape index: {}]   ;;  %s3252_s11 = inlined_call_operand.vmem [shape: bf16[32,64], index: 11, kind: input, shape index: {}]   ;;  %s3253_s12 = inlined_call_operand.vmem [shape: f32[1,64], index: 12, kind: input, shape index: {}]   ;;  %s3254_s13 = inlined_call_operand.vmem [shape: bf16[64,32], index: 13, kind: input, shape index: {}]   ;;  %s3255_s14 = inlined_call_operand.vmem [shape: f32[1,32], index: 14, kind: input, shape index: {}]   ;;  %s3256_s15 = inlined_call_operand.vmem [shape: f32[1,32], index: 15, kind: input, shape index: {}]   ;;  %s3257_s16 = inlined_call_operand.vmem [shape: f32[1,32], index: 16, kind: input, shape index: {}]   ;;  %s3258_s17 = inlined_call_operand.hbm [shape: f32[2,8,32], index: 17, kind: output, shape index: {}]  }
   0x1   :  { %3265 = sst [smem:[#allocation10_spill]] %s3241_s0 }
   0x2   :  { %3266 = sst [smem:[#allocation11_spill]] %s3242_s1 }
   0x3   :  { %3267 = sst [smem:[#allocation12_spill]] %s3243_s2 }
   0x4   :  { %3268 = sst [smem:[#allocation13_spill]] %s3244_s3 }
   0x5   :  { %3269 = sst [smem:[#allocation14_spill]] %s3245_s4 }
   0x6   :  { %22 = vsyncpa [#allocation3], 0 }
   0x7   :  { %24 = vsyncpa [#allocation3 + $0x1], 0  ;;  %s2822_s24 = smov 0   ;;  %s2824_s25 = smov 0  }
   0x8   :  { %s2826_s26 = smov 0   ;;  %s2828_s27 = smov 0  }
   0x9 LB: > { %3270 = sst [smem:[#allocation5_spill]] %s2715_s24  ;;  %s2843_s28 = sadd.s32 4294967295, %s2727_s27   ;;  %s2727_s27 = sphi %s2828_s27, %s3284_s27   ;;  %s2723_s26 = sphi %s2826_s26, %s3286_s26   ;;  %s2719_s25 = sphi %s2824_s25, %s3288_s25   ;;  %s2715_s24 = sphi %s2822_s24, %s3287_s24  }
   0xa   : > { %3271 = sst [smem:[#allocation6_spill]] %s2723_s26  ;;  %s2235_s29 = sadd.s32 4294967294, %s2727_s27  }
   0xb   : > { %s2847_s0 = sadd.s32 1, %s2727_s27   ;;  %s399_s30 = sadd.s32 1, %s2723_s26 }
   0xc   : > { %3272 = sst [smem:[#allocation7_spill]] %s2847_s0  ;;  %s396_s18 = ssub.s32 %s2727_s27, %s2847_s0 }
   0xd   : > { %p409_p0 = scmp.ne.s32.totalorder %s2723_s26, %s2719_s25  ;;  %p397_p1 = scmp.eq.s32.totalorder %s396_s18, 0 }
   0xe   : > { %p410_p2 = scmp.eq.s32.totalorder %s2843_s28, 1  ;;  %p415_p3 = scmp.ne.s32.totalorder %s2719_s25, %s2715_s24 }
   0xf   : > { %p416_p4 = scmp.eq.s32.totalorder %s2235_s29, 1  ;;  %p2238_p7 = scmp.ge.s32.totalorder %s2727_s27, 1 }
  0x10   : > { %s2858_s19 = scalar_select %p397_p1, %s2723_s26, %s399_s30  }
  0x11   : > { %p2860_p5 = por %p410_p2, %p409_p0  ;;  %p2864_p6 = por %p416_p4, %p415_p3 }
  0x12   : > { %3273 = sst [smem:[#allocation8_spill]] %s2858_s19  ;;  %p489_p8 = scmp.lt.s32.totalorder %s2727_s27, 3 }
  0x13   : > { %s3275_s20 = scalar_select %p2864_p6, 1, 0 }
  0x14   : > { %p490_p9 = pnand %p2238_p7, %p489_p8 }
  0x15   : > { %3276 = sst [smem:[#allocation9_spill]] %s3275_s20  ;;  %p540_p10 = scmp.lt.s32.totalorder (!%p490_p9), %s2843_s28, 1 }
  0x16   : > { %493 = sbr.rel (%p490_p9) target bundleno = 2198 (0x896), region = 88  ;;  %s3277_s23 = sld [smem:[#allocation11_spill]] (!%p490_p9) }
  0x17   : > { %s3278_s20 = sld [smem:[#allocation10_spill]] (!%p490_p9)  ;;  %s537_s26 = sand.u32 (!%p490_p9), 1, %s2719_s25  }
  0x18   : > { %s3279_s2 = sld [smem:[#allocation12_spill]] (!%p490_p9)  ;;  %s2239_s0 = sshll.u32 (!%p490_p9), %s537_s26, 3 }
  0x19   : > { %s3280_s3 = sld [smem:[#allocation13_spill]] (!%p490_p9)  ;;  %s2317_s30 = sshll.u32 (!%p490_p9), %s2843_s28, 7 }
  0x1a   : > { %s3281_s4 = sld [smem:[#allocation14_spill]] (!%p490_p9)  ;;  %s539_s18 = scalar_lea.vmem (!%p490_p9), [#allocation2], %s2239_s0 }
  0x1b   : > { %v2729_v1 = vmov 0.0   ;;  %vm2730_vm0 = vmmov 0   ;;  %s541_s29 = scalar_select %p540_p10, %s2843_s28, 1  ;;  %vm648_vm1 = vcmask 261120   ;;  %v2257_v43 = vld [vmem:[%s3246_s5] ss:$0 sm:$0xff] }
  0x1c   : > { %v2617_v0 = vld [vmem:[%s3277_s23 + $0x8] sm:$0xff]   ;;  %2388 = vmatprep.subr.bf16.mxu0 %v2729_v1  ;;  %2396 = vmatprep.subr.bf16.mxu1 %v2729_v1  ;;  %v2618_v2 = vld [vmem:[%s3277_s23 + $0x18] sm:$0xff]   ;;  %v2619_v3 = vld [vmem:[%s3277_s23] sm:$0xff]   ;;  %vm1324_vm2 = vcmask 64512   ;;  %vm1564_vm3 = vcmask 1043456   ;;  %vm2087_vm4 = vcmask 523264  }
  0x1d   : > { %2389 = vmatpush3.bf16.msra.mxu0 %v2617_v0  ;;  %2392 = vmatprep.mubr.msk.bf16.mxu0 %vm2730_vm0, %v2729_v1  ;;  %v2620_v4 = vld [vmem:[%s3277_s23 + $0x10] sm:$0xff]   ;;  %s2240_s19 = sshll.u32 %s541_s29, 3  ;;  %v2621_v5 = vld [vmem:[%s3277_s23 + $0x28] sm:$0xff]   ;;  %v2622_v6 = vld [vmem:[%s3277_s23 + $0x38] sm:$0xff]   ;;  %s2176_s21 = sshll.u32 %s539_s18, 4  ;;  %s2177_s21 = int_to_ptr.vmem [resolvable:$true] %s2176_s21 }
  0x1e   : > { %2397 = vmatpush3.bf16.msra.mxu1 %v2618_v2  ;;  %2390 = vmatprep.subr.bf16.mxu0 %v2729_v1  ;;  %s543_s24 = scalar_lea.vmem %s3278_s20, %s2240_s19  ;;  %v2623_v9 = vld [vmem:[%s3277_s23 + $0x20] sm:$0xff]   ;;  %v2624_v10 = vld [vmem:[%s3277_s23 + $0x30] sm:$0xff]   ;;  %v2625_v11 = vld [vmem:[%s3279_s2 + $0x8] sm:$0xff]   ;;  %s2731_s20 = smov [#allocation2]  }
  0x1f   : > { %2398 = vmatprep.subr.bf16.mxu1 %v2729_v1  ;;  %2400 = vmatprep.mubr.msk.bf16.mxu1 %vm2730_vm0, %v2729_v1  ;;  %v2902_v7 = vld [vmem:[%s543_s24] sm:$0xff]  ;;  %v2626_v12 = vld [vmem:[%s3279_s2 + $0x18] sm:$0xff]   ;;  %v2628_v14 = vld [vmem:[%s3279_s2 + $0x10] sm:$0xff]   ;;  %s2667_s24 = scalar_lea.vmem %s2177_s21, 128  ;;  %s2671_s29 = sshll.u32 %s2731_s20, 4  ;;  %s2672_s29 = int_to_ptr.vmem [resolvable:$false] %s2671_s29 }
  0x20   : > { %v2907_v8 = vpack.c.bf16 %v2902_v7, %v2902_v7  ;;  %v2627_v13 = vld [vmem:[%s3279_s2] sm:$0xff]   ;;  %v2629_v15 = vld [vmem:[%s3279_s2 + $0x28] sm:$0xff]   ;;  %v2630_v16 = vld [vmem:[%s3279_s2 + $0x38] sm:$0xff]   ;;  %p2668_p11 = scmp.ne.s32.totalorder %s2177_s21, %s2667_s24  ;;  %s2673_s28 = scalar_lea.vmem %s2672_s29, 256 }
  0x21   : > { %2391 = vmatpush3.bf16.msra.mxu0 %v2619_v3  ;;  %v2631_v17 = vld [vmem:[%s3279_s2 + $0x20] sm:$0xff]   ;;  %v2632_v18 = vld [vmem:[%s3279_s2 + $0x30] sm:$0xff]   ;;  %v2633_v19 = vld [vmem:[%s3280_s3 + $0x8] sm:$0xff]   ;;  %p2674_p0 = scmp.lt.s32.totalorder %s2177_s21, %s2672_s29  ;;  %p2675_p1 = scmp.lt.s32.totalorder %s2673_s28, %s2667_s24 }
  0x22   : > { %2399 = vmatpush3.bf16.msra.mxu1 %v2620_v4  ;;  %2404 = vmatprep.subr.bf16.mxu0 %v2729_v1  ;;  %v2634_v20 = vld [vmem:[%s3280_s3] sm:$0xff]   ;;  %v2635_v21 = vld [vmem:[%s3280_s3 + $0x18] sm:$0xff]   ;;  %v2636_v22 = vld [vmem:[%s3280_s3 + $0x10] sm:$0xff]   ;;  %p2669_p12 = pnand %p2668_p11, %p2860_p5 }
  0x23   : > { %2412 = vmatprep.subr.bf16.mxu1 %v2729_v1  ;;  %v2637_v23 = vld [vmem:[%s3280_s3 + $0x28] sm:$0xff]   ;;  %v2638_v24 = vld [vmem:[%s3280_s3 + $0x20] sm:$0xff]   ;;  %v2639_v25 = vld [vmem:[%s3280_s3 + $0x38] sm:$0xff]   ;;  %p2676_p2 = por %p2675_p1, %p2674_p0 }
  0x24   : > { %2393 = vmatmul.mubr.msk.bf16.vlgmr.msra.gmra.mxu0 %vm648_vm1, %v2907_v8  ;;  %v2640_v26 = vld [vmem:[%s3280_s3 + $0x30] sm:$0xff]   ;;  %v2258_v44 = vld [vmem:[%s3246_s5 + $0x1] ss:$0 sm:$0xff]  ;;  %v2241_v45 = vld [vmem:[%s3281_s4] ss:$0 sm:$0xff]  ;;  %s2174_s3 = scalar_lea.hbm %s3258_s17, %s2317_s30  ;;  %p2670_p13 = pneg %p2669_p12 }
  0x25   : > { %2401 = vmatmul.mubr.msk.bf16.vlgmr.msra.gmra.mxu1 %vm648_vm1, %v2907_v8  ;;  %2405 = vmatpush3.bf16.msra.mxu0 %v2621_v5  ;;  %v2242_v46 = vld [vmem:[%s3281_s4 + $0x1] ss:$0 sm:$0xff]  ;;  %v2259_v61 = vld [vmem:[%s3246_s5 + $0x2] ss:$0 sm:$0xff]  ;;  %v2260_v3 = vld [vmem:[%s3246_s5 + $0x3] ss:$0 sm:$0xff] }
  0x26   : > { %2413 = vmatpush3.bf16.msra.mxu1 %v2622_v6  ;;  %2406 = vmatprep.subr.bf16.mxu0 %v2729_v1  ;;  %v2243_v4 = vld [vmem:[%s3281_s4 + $0x2] ss:$0 sm:$0xff]  ;;  %v2244_v5 = vld [vmem:[%s3281_s4 + $0x3] ss:$0 sm:$0xff]  ;;  %s2163_s4 = scalar_lea.sflag [#allocation3], %s537_s26  ;;  %p2677_p3 = pnand %p2676_p2, %p2670_p13 }
  0x27   : > { %2414 = vmatprep.subr.bf16.mxu1 %v2729_v1  ;;  %2408 = vmatprep.mubr.msk.bf16.mxu0 %vm2730_vm0, %v2729_v1 }
  0x28   : > { %2416 = vmatprep.mubr.msk.bf16.mxu1 %vm2730_vm0, %v2729_v1 }
  0x29   : > { %2407 = vmatpush3.bf16.msra.mxu0 %v2623_v9 }
  0x2a   : > { %2415 = vmatpush3.bf16.msra.mxu1 %v2624_v10  ;;  %2420 = vmatprep.subr.bf16.mxu0 %v2729_v1 }
  0x2b   : > { %2428 = vmatprep.subr.bf16.mxu1 %v2729_v1 }
  0x2c   : > { %2409 = vmatmul.mubr.msk.bf16.vlgmr.msra.gmra.mxu0 %vm648_vm1, %v2907_v8 }
  0x2d   : > { %2417 = vmatmul.mubr.msk.bf16.vlgmr.msra.gmra.mxu1 %vm648_vm1, %v2907_v8  ;;  %2421 = vmatpush3.bf16.msra.mxu0 %v2625_v11 }
  0x2e   : > { %2429 = vmatpush3.bf16.msra.mxu1 %v2626_v12  ;;  %2422 = vmatprep.subr.bf16.mxu0 %v2729_v1 }
  0x2f   : > { %2430 = vmatprep.subr.bf16.mxu1 %v2729_v1  ;;  %2424 = vmatprep.mubr.msk.bf16.mxu0 %vm2730_vm0, %v2729_v1 }
  0x30   : > { %2432 = vmatprep.mubr.msk.bf16.mxu1 %vm2730_vm0, %v2729_v1 }
  0x31   : > { %2423 = vmatpush3.bf16.msra.mxu0 %v2627_v13 }
  0x32   : > { %2431 = vmatpush3.bf16.msra.mxu1 %v2628_v14  ;;  %2436 = vmatprep.subr.bf16.mxu0 %v2729_v1 }
  0x33   : > { %2444 = vmatprep.subr.bf16.mxu1 %v2729_v1 }
  0x34   : > { %2425 = vmatmul.mubr.msk.bf16.vlgmr.msra.gmra.mxu0 %vm648_vm1, %v2907_v8 }
  0x35   : > { %2433 = vmatmul.mubr.msk.bf16.vlgmr.msra.gmra.mxu1 %vm648_vm1, %v2907_v8  ;;  %2437 = vmatpush3.bf16.msra.mxu0 %v2629_v15 }
  0x36   : > { %2445 = vmatpush3.bf16.msra.mxu1 %v2630_v16  ;;  %2438 = vmatprep.subr.bf16.mxu0 %v2729_v1 }
  0x37   : > { %2446 = vmatprep.subr.bf16.mxu1 %v2729_v1  ;;  %2440 = vmatprep.mubr.msk.bf16.mxu0 %vm2730_vm0, %v2729_v1 }
  0x38   : > { %2448 = vmatprep.mubr.msk.bf16.mxu1 %vm2730_vm0, %v2729_v1 }
  0x39   : > { %2439 = vmatpush3.bf16.msra.mxu0 %v2631_v17 }
  0x3a   : > { %2447 = vmatpush3.bf16.msra.mxu1 %v2632_v18  ;;  %2452 = vmatprep.subr.bf16.mxu0 %v2729_v1 }
  0x3b   : > { %2460 = vmatprep.subr.bf16.mxu1 %v2729_v1 }
  0x3c   : > { %2441 = vmatmul.mubr.msk.bf16.vlgmr.msra.gmra.mxu0 %vm648_vm1, %v2907_v8 }
  0x3d   : > { %2449 = vmatmul.mubr.msk.bf16.vlgmr.msra.gmra.mxu1 %vm648_vm1, %v2907_v8  ;;  %2456 = vmatprep.mubr.msk.bf16.mxu0 %vm2730_vm0, %v2729_v1 }
  0x3e   : > { %2464 = vmatprep.mubr.msk.bf16.mxu1 %vm2730_vm0, %v2729_v1  ;;  %2453 = vmatpush3.bf16.msra.mxu0 %v2633_v19 }
  0x3f   : > { %2454 = vmatprep.subr.bf16.mxu0 %v2729_v1  ;;  %2461 = vmatpush3.bf16.msra.mxu1 %v2635_v21 }
  0x40   : > { %2462 = vmatprep.subr.bf16.mxu1 %v2729_v1 }
  0x42   : > { %2455 = vmatpush3.bf16.msra.mxu0 %v2634_v20 }
  0x43   : > { %2468 = vmatprep.subr.bf16.mxu0 %v2729_v1  ;;  %2463 = vmatpush3.bf16.msra.mxu1 %v2636_v22 }
  0x44   : > { %2476 = vmatprep.subr.bf16.mxu1 %v2729_v1 }
  0x45   : > { %2457 = vmatmul.mubr.msk.bf16.vlgmr.msra.gmra.mxu0 %vm648_vm1, %v2907_v8 }
  0x46   : > { %2469 = vmatpush3.bf16.msra.mxu0 %v2637_v23  ;;  %2472 = vmatprep.mubr.msk.bf16.mxu0 %vm2730_vm0, %v2729_v1 }
  0x47   : > { %2470 = vmatprep.subr.bf16.mxu0 %v2729_v1  ;;  %2465 = vmatmul.mubr.msk.bf16.vlgmr.msra.gmra.mxu1 %vm648_vm1, %v2907_v8 }
  0x48   : > { %2477 = vmatpush3.bf16.msra.mxu1 %v2639_v25  ;;  %2480 = vmatprep.mubr.msk.bf16.mxu1 %vm2730_vm0, %v2729_v1 }
  0x49   : > { %2478 = vmatprep.subr.bf16.mxu1 %v2729_v1 }
  0x4a   : > { %2471 = vmatpush3.bf16.msra.mxu0 %v2638_v24 }
  0x4b   : > { %2484 = vmatprep.subr.bf16.mxu0 %v2729_v1 }
  0x4c   : > { %2479 = vmatpush3.bf16.msra.mxu1 %v2640_v26 }
  0x4d   : > { %2473 = vmatmul.mubr.msk.bf16.vlgmr.msra.gmra.mxu0 %vm648_vm1, %v2907_v8  ;;  %2490 = vmatprep.subr.bf16.mxu1 %v2729_v1 }
  0x4e   : > { %2486 = vmatprep.mubr.msk.bf16.mxu0 %vm2730_vm0, %v2729_v1 }
  0x4f   : > { %2481 = vmatmul.mubr.msk.bf16.vlgmr.msra.gmra.mxu1 %vm648_vm1, %v2907_v8 }
  0x50   : > { %2492 = vmatprep.mubr.msk.bf16.mxu1 %vm2730_vm0, %v2729_v1 }
  0xe4   : > { %v686_v27 = vpop.f32.mrf.mxu0 }
  0xe5   : > { %v738_v28 = vpop.f32.mrf.mxu1  ;;  %v687_v51 = vadd.f32 %v2241_v45, %v686_v27 }
  0xe6   : > { %v2394_v29 = vpop.f32.mrf.mxu0  ;;  %v739_v52 = vadd.f32 %v2242_v46, %v738_v28 }
  0xe7   : > { %v2402_v30 = vpop.f32.mrf.mxu1  ;;  %v1312_v62 = vmul.f32 0.35355338, %v687_v51  ;;  %v2273_v29 = vld [vmem:[%s3247_s6] ss:$0 sm:$0xff] }
  0xe8   : > { %v689_v31 = vpop.f32.mrf.mxu0  ;;  %v1313_v63 = vmul.f32 0.35355338, %v739_v52 }
  0xe9   : > { %v741_v32 = vpop.f32.mrf.mxu1  ;;  %v1316_v11 = vpack.c.bf16 %v1312_v62, %v1312_v62 }
  0xea   : > { %v2395_v33 = vpop.f32.mrf.mxu0  ;;  %v1317_v12 = vpack.c.bf16 %v1313_v63, %v1313_v63 }
  0xeb   : > { %v2403_v34 = vpop.f32.mrf.mxu1  ;;  %v2274_v33 = vld [vmem:[%s3247_s6 + $0x1] ss:$0 sm:$0xff] }
  0xec   : > { %v790_v35 = vpop.f32.mrf.mxu0 }
  0xed   : > { %v842_v36 = vpop.f32.mrf.mxu1  ;;  %v791_v15 = vadd.f32 %v2243_v4, %v790_v35 }
  0xee   : > { %v2410_v37 = vpop.f32.mrf.mxu0  ;;  %v843_v16 = vadd.f32 %v2244_v5, %v842_v36 }
  0xef   : > { %v2418_v38 = vpop.f32.mrf.mxu1  ;;  %v1314_v25 = vmul.f32 0.35355338, %v791_v15 }
  0xf0   : > { %v793_v39 = vpop.f32.mrf.mxu0  ;;  %v1315_v26 = vmul.f32 0.35355338, %v843_v16 }
  0xf1   : > { %v845_v40 = vpop.f32.mrf.mxu1  ;;  %v1318_v27 = vpack.c.bf16 %v1314_v25, %v1314_v25 }
  0xf2   : > { %v2411_v41 = vpop.f32.mrf.mxu0  ;;  %v1319_v28 = vpack.c.bf16 %v1315_v26, %v1315_v26 }
  0xf3   : > { %v2419_v42 = vpop.f32.mrf.mxu1 }
  0xf4   : > { %v918_v47 = vpop.f32.mrf.mxu0 }
  0xf5   : > { %v970_v48 = vpop.f32.mrf.mxu1  ;;  %v919_v49 = vadd.f32 %v2257_v43, %v918_v47 }
  0xf6   : > { %v971_v50 = vadd.f32 %v2258_v44, %v970_v48  ;;  %v2426_v53 = vpop.f32.mrf.mxu0 }
  0xf7   : > { %v2434_v54 = vpop.f32.mrf.mxu1  ;;  %v1320_v55 = vpack.c.bf16 %v919_v49, %v919_v49 }
  0xf8   : > { %v1321_v56 = vpack.c.bf16 %v971_v50, %v971_v50  ;;  %v921_v57 = vpop.f32.mrf.mxu0 }
  0xf9   : > { %v973_v58 = vpop.f32.mrf.mxu1  ;;  %v1329_v59 = vsel %vm1324_vm2, %v1320_v55, 0 }
  0xfa   : > { %v1375_v60 = vsel %vm1324_vm2, %v1321_v56, 0  ;;  %v2427_v0 = vpop.f32.mrf.mxu0  ;;  %2485 = vmatpush3.bf16.xpose.msra.mxu0 %v1329_v59 }
  0xfb   : > { %v2435_v2 = vpop.f32.mrf.mxu1  ;;  %2491 = vmatpush3.bf16.xpose.msra.mxu1 %v1375_v60  ;;  %2496 = vmatprep.subr.bf16.mxu0 %v2729_v1 }
  0xfc   : > { %2502 = vmatprep.subr.bf16.mxu1 %v2729_v1  ;;  %v1022_v6 = vpop.f32.mrf.mxu0 }
  0xfd   : > { %v1074_v8 = vpop.f32.mrf.mxu1  ;;  %v1023_v9 = vadd.f32 %v2259_v61, %v1022_v6 }
  0xfe   : > { %v1075_v10 = vadd.f32 %v2260_v3, %v1074_v8  ;;  %v2442_v13 = vpop.f32.mrf.mxu0 }
  0xff   : > { %v2450_v14 = vpop.f32.mrf.mxu1  ;;  %v1322_v17 = vpack.c.bf16 %v1023_v9, %v1023_v9 }
 0x100   : > { %v1323_v18 = vpack.c.bf16 %v1075_v10, %v1075_v10  ;;  %v1025_v19 = vpop.f32.mrf.mxu0 }
 0x101   : > { %v1077_v20 = vpop.f32.mrf.mxu1  ;;  %v1421_v21 = vsel %vm1324_vm2, %v1322_v17, 0  ;;  %2487 = vmatmul.mubr.msk.bf16.vlgmr.msra.gmra.mxu0 %vm1324_vm2, %v1316_v11 }
 0x102   : > { %v1467_v22 = vsel %vm1324_vm2, %v1323_v18, 0  ;;  %2493 = vmatmul.mubr.msk.bf16.vlgmr.msra.gmra.mxu1 %vm1324_vm2, %v1317_v12  ;;  %v2443_v23 = vpop.f32.mrf.mxu0  ;;  %2497 = vmatpush3.bf16.xpose.msra.mxu0 %v1421_v21 }
 0x103   : > { %v2451_v24 = vpop.f32.mrf.mxu1  ;;  %2503 = vmatpush3.bf16.xpose.msra.mxu1 %v1467_v22  ;;  %2498 = vmatprep.mubr.msk.bf16.mxu0 %vm2730_vm0, %v2729_v1 }
 0x104   : > { %2504 = vmatprep.mubr.msk.bf16.mxu1 %vm2730_vm0, %v2729_v1  ;;  %2508 = vmatprep.subr.bf16.mxu0 %v2729_v1 }
 0x105   : > { %2514 = vmatprep.subr.bf16.mxu1 %v2729_v1  ;;  %v1150_v30 = vpop.f32.mrf.mxu0 }
 0x106   : > { %v1151_v31 = vadd.f32 %v2273_v29, %v1150_v30 }
 0x107   : > { %v2458_v32 = vpop.f32.mrf.mxu0  ;;  %v1202_v36 = vpop.f32.mrf.mxu1 }
 0x108   : > { %v1557_v34 = vpack.c.bf16 %v1151_v31, %v1151_v31  ;;  %v1203_v38 = vadd.f32 %v2274_v33, %v1202_v36  ;;  %v2275_v33 = vld [vmem:[%s3247_s6 + $0x2] ss:$0 sm:$0xff]  ;;  %v2276_v36 = vld [vmem:[%s3247_s6 + $0x3] ss:$0 sm:$0xff] }
 0x109   : > { %2499 = vmatmul.mubr.msk.bf16.vlgmr.msra.gmra.mxu0 %vm1324_vm2, %v1318_v27  ;;  %v1153_v35 = vpop.f32.mrf.mxu0  ;;  %v2466_v40 = vpop.f32.mrf.mxu1 }
 0x10a   : > { %2505 = vmatmul.mubr.msk.bf16.vlgmr.msra.gmra.mxu1 %vm1324_vm2, %v1319_v28  ;;  %2510 = vmatprep.mubr.msk.bf16.mxu0 %vm2730_vm0, %v2729_v1  ;;  %v1566_v37 = vsel %vm1564_vm3, %v1557_v34, 0  ;;  %v1558_v41 = vpack.c.bf16 %v1203_v38, %v1203_v38 }
 0x10b   : > { %2516 = vmatprep.mubr.msk.bf16.mxu1 %vm2730_vm0, %v2729_v1  ;;  %v2459_v39 = vpop.f32.mrf.mxu0  ;;  %2509 = vmatpush3.bf16.msra.mxu0 %v1566_v37  ;;  %v1205_v42 = vpop.f32.mrf.mxu1 }
 0x10c   : > { %2520 = vmatprep.subr.bf16.mxu0 %v2729_v1  ;;  %v1612_v44 = vsel %vm1564_vm3, %v1558_v41, 0 }
 0x10d   : > { %v3083_v43 = vpop.f32.mrf.mxu0  ;;  %v2467_v45 = vpop.f32.mrf.mxu1  ;;  %2515 = vmatpush3.bf16.msra.mxu1 %v1612_v44 }
 0x10e   : > { %2526 = vmatprep.subr.bf16.mxu1 %v2729_v1  ;;  %v1255_v35 = vadd.f32 %v2275_v33, %v3083_v43 }
 0x10f   : > { %v2474_v46 = vpop.f32.mrf.mxu0  ;;  %v3087_v48 = vpop.f32.mrf.mxu1 }
 0x110   : > { %v1559_v39 = vpack.c.bf16 %v1255_v35, %v1255_v35  ;;  %v1307_v40 = vadd.f32 %v2276_v36, %v3087_v48  ;;  %v606_v48 = vld [vmem:[%s3248_s7] sm:$0xf] }
 0x111   : > { %v1257_v47 = vpop.f32.mrf.mxu0  ;;  %v2482_v50 = vpop.f32.mrf.mxu1 }
 0x112   : > { %v1658_v45 = vsel %vm1564_vm3, %v1559_v39, 0  ;;  %v1560_v46 = vpack.c.bf16 %v1307_v40, %v1307_v40 }
 0x113   : > { %v2475_v49 = vpop.f32.mrf.mxu0  ;;  %v1309_v51 = vpop.f32.mrf.mxu1 }
 0x114   : > { %v1704_v50 = vsel %vm1564_vm3, %v1560_v46, 0 }
 0x115   : > { %v2483_v52 = vpop.f32.mrf.mxu1 }
 0x1c1   : > { %v1365_v53 = vpop.f32.mrf.mxu0 }
 0x1c2   : > { %v1411_v54 = vpop.f32.mrf.mxu1  ;;  %v1509_v55 = vsel %vm1324_vm2, %v1365_v53, -inf }
 0x1c3   : > { %1510 = vmax.xlane.f32.xlu0 %v1509_v55  ;;  %v2488_v57 = vpop.f32.mrf.mxu0  ;;  %v1512_v60 = vsel %vm1324_vm2, %v1411_v54, -inf }
 0x1c4   : > { %v2494_v56 = vpop.f32.mrf.mxu1  ;;  %v607_v57 = vld [vmem:[%s3248_s7 + $0x4] sm:$0xf] }
 0x1c5   : > { %v1368_v58 = vpop.f32.mrf.mxu0 }
 0x1c6   : > { %v1414_v59 = vpop.f32.mrf.mxu1  ;;  %v1800_v58 = vsel %vm1564_vm3, %v607_v57, 0 }
 0x1c7   : > { %1513 = vmax.xlane.f32.xlu0 %v1512_v60  ;;  %v2489_v62 = vpop.f32.mrf.mxu0  ;;  %v608_v59 = vld [vmem:[%s3248_s7 + $0x8] sm:$0xf] }
 0x1c8   : > { %v2495_v61 = vpop.f32.mrf.mxu1  ;;  %v1846_v62 = vsel %vm1564_vm3, %v608_v59, 0 }
 0x1c9   : > { %v1457_v63 = vpop.f32.mrf.mxu0 }
 0x1ca   : > { %v1503_v0 = vpop.f32.mrf.mxu1  ;;  %v1515_v2 = vsel %vm1324_vm2, %v1457_v63, -inf }
 0x1cb   : > { %1516 = vmax.xlane.f32.xlu1 %v1515_v2  ;;  %v2500_v4 = vpop.f32.mrf.mxu0  ;;  %v1518_v8 = vsel %vm1324_vm2, %v1503_v0, -inf }
 0x1cc   : > { %v2506_v3 = vpop.f32.mrf.mxu1 }
 0x1cd   : > { %v1460_v5 = vpop.f32.mrf.mxu0 }
 0x1ce   : > { %v1506_v6 = vpop.f32.mrf.mxu1 }
 0x1cf   : > { %1519 = vmax.xlane.f32.xlu1 %v1518_v8  ;;  %v2501_v10 = vpop.f32.mrf.mxu0 }
 0x1d0   : > { %v2507_v9 = vpop.f32.mrf.mxu1 }
 0x24c   : > { %v1511_v11 = vpop.xlane.xlu0 %1510 }
 0x24d   : > { %v1521_v12 = vsub.f32 %v1365_v53, %v1511_v11  ;;  %v1754_v53 = vsel %vm1564_vm3, %v606_v48, 0 }
 0x24f   : > { %v1525_v13 = vmul.f32 1.442695, %v1521_v12 }
 0x250   : > { %v1514_v14 = vpop.xlane.xlu0 %1513 }
 0x251   : > { %2647 = vpow2.f32 %v1525_v13  ;;  %v1522_v15 = vsub.f32 %v1411_v54, %v1514_v14 }
 0x253   : > { %v1527_v16 = vmul.f32 1.442695, %v1522_v15 }
 0x254   : > { %v1517_v17 = vpop.xlane.xlu1 %1516 }
 0x255   : > { %2649 = vpow2.f32 %v1527_v16  ;;  %v1523_v18 = vsub.f32 %v1457_v63, %v1517_v17 }
 0x257   : > { %v1529_v19 = vmul.f32 1.442695, %v1523_v18 }
 0x258   : > { %v1520_v20 = vpop.xlane.xlu1 %1519 }
 0x259   : > { %2651 = vpow2.f32 %v1529_v19  ;;  %v1524_v21 = vsub.f32 %v1503_v0, %v1520_v20  ;;  %v609_v0 = vld [vmem:[%s3248_s7 + $0xc] sm:$0xf] }
 0x25a   : > { %v1892_v5 = vsel %vm1564_vm3, %v609_v0, 0 }
 0x25b   : > { %v1531_v22 = vmul.f32 1.442695, %v1524_v21 }
 0x25d   : > { %2653 = vpow2.f32 %v1531_v22 }
 0x25e   : > { %v2648_v23 = vpop.eup %2647 }
 0x25f   : > { %v1533_v24 = vsel %vm1324_vm2, %v2648_v23, 0.0 }
 0x260   : > { %1534 = vadd.xlane.f32.xlu0 %v1533_v24 }
 0x262   : > { %v2650_v25 = vpop.eup %2649 }
 0x263   : > { %v1536_v26 = vsel %vm1324_vm2, %v2650_v25, 0.0 }
 0x264   : > { %1537 = vadd.xlane.f32.xlu1 %v1536_v26 }
 0x266   : > { %v2652_v27 = vpop.eup %2651 }
 0x267   : > { %v1539_v28 = vsel %vm1324_vm2, %v2652_v27, 0.0 }
 0x268   : > { %1540 = vadd.xlane.f32.xlu0 %v1539_v28 }
 0x26a   : > { %v2654_v29 = vpop.eup %2653 }
 0x26b   : > { %v1542_v30 = vsel %vm1324_vm2, %v2654_v29, 0.0 }
 0x26c   : > { %1543 = vadd.xlane.f32.xlu1 %v1542_v30 }
 0x2e9   : > { %v1535_v31 = vpop.xlane.xlu0 %1534 }
 0x2ea   : > { %2655 = vrcp.f32 %v1535_v31 }
 0x2ed   : > { %v1538_v32 = vpop.xlane.xlu1 %1537 }
 0x2ee   : > { %2657 = vrcp.f32 %v1538_v32 }
 0x2f1   : > { %v1541_v34 = vpop.xlane.xlu0 %1540 }
 0x2f2   : > { %2659 = vrcp.f32 %v1541_v34 }
 0x2f5   : > { %v1544_v37 = vpop.xlane.xlu1 %1543 }
 0x2f6   : > { %2661 = vrcp.f32 %v1544_v37 }
 0x2f7   : > { %v2656_v38 = vpop.eup %2655 }
 0x2f8   : > { %v1546_v41 = vmul.f32 %v2656_v38, %v2648_v23  ;;  %v2301_v38 = vld [vmem:[%s3249_s8] ss:$0 sm:$0xff] }
 0x2fa   : > { %v1553_v42 = vpack.c.bf16 %v1546_v41, %v1546_v41 }
 0x2fb   : > { %v2658_v44 = vpop.eup %2657 }
 0x2fc   : > { %2511 = vmatmul.mubr.msk.bf16.vlgmr.msra.gmra.mxu0 %vm1324_vm2, %v1553_v42  ;;  %v1548_v47 = vmul.f32 %v2658_v44, %v2650_v25 }
 0x2fd   : > { %2521 = vmatpush3.bf16.msra.mxu0 %v1658_v45  ;;  %2522 = vmatprep.mubr.msk.bf16.mxu0 %vm2730_vm0, %v2729_v1 }
 0x2fe   : > { %v1554_v43 = vpack.c.bf16 %v1548_v47, %v1548_v47  ;;  %2532 = vmatprep.subr.bf16.mxu0 %v2729_v1 }
 0x2ff   : > { %v2660_v49 = vpop.eup %2659 }
 0x300   : > { %2517 = vmatmul.mubr.msk.bf16.vlgmr.msra.gmra.mxu1 %vm1324_vm2, %v1554_v43  ;;  %v1550_v51 = vmul.f32 %v2660_v49, %v2652_v27 }
 0x301   : > { %2527 = vmatpush3.bf16.msra.mxu1 %v1704_v50  ;;  %2528 = vmatprep.mubr.msk.bf16.mxu1 %vm2730_vm0, %v2729_v1 }
 0x302   : > { %v1555_v52 = vpack.c.bf16 %v1550_v51, %v1550_v51  ;;  %2538 = vmatprep.subr.bf16.mxu1 %v2729_v1 }
 0x303   : > { %v2662_v54 = vpop.eup %2661 }
 0x304   : > { %2523 = vmatmul.mubr.msk.bf16.vlgmr.msra.gmra.mxu0 %vm1324_vm2, %v1555_v52  ;;  %v1552_v55 = vmul.f32 %v2662_v54, %v2654_v29  ;;  %v2642_v54 = vld [vmem:[%s3252_s11] sm:$0xff]  }
 0x305   : > { %2533 = vmatpush3.bf16.msra.mxu0 %v1754_v53  ;;  %2534 = vmatprep.mubr.msk.bf16.mxu0 %vm2730_vm0, %v2729_v1  ;;  %v2641_v53 = vld [vmem:[%s3252_s11 + $0x8] sm:$0xff]  }
 0x306   : > { %v1556_v56 = vpack.c.bf16 %v1552_v55, %v1552_v55  ;;  %2544 = vmatprep.subr.bf16.mxu0 %v2729_v1  ;;  %v2644_v55 = vld [vmem:[%s3254_s13 + $0x10] sm:$0xff]  }
 0x308   : > { %2529 = vmatmul.mubr.msk.bf16.vlgmr.msra.gmra.mxu1 %vm1324_vm2, %v1556_v56 }
 0x309   : > { %2540 = vmatprep.mubr.msk.bf16.mxu1 %vm2730_vm0, %v2729_v1  ;;  %2539 = vmatpush3.bf16.msra.mxu1 %v1800_v58 }
 0x30a   : > { %2550 = vmatprep.subr.bf16.mxu1 %v2729_v1 }
 0x3bc   : > { %v1602_v60 = vpop.f32.mrf.mxu0 }
 0x3bd   : > { %v1746_v61 = vpack.c.bf16 %v1602_v60, %v1602_v60  ;;  %v2302_v60 = vld [vmem:[%s3250_s9] ss:$0 sm:$0xff] }
 0x3be   : > { %v2512_v63 = vpop.f32.mrf.mxu0 }
 0x3bf   : > { %2535 = vmatmul.mubr.msk.bf16.vlgmr.msra.gmra.mxu0 %vm1324_vm2, %v1746_v61 }
 0x3c0   : > { %v1605_v2 = vpop.f32.mrf.mxu0  ;;  %v1648_v3 = vpop.f32.mrf.mxu1  ;;  %2545 = vmatpush3.bf16.msra.mxu0 %v1846_v62  ;;  %2546 = vmatprep.mubr.msk.bf16.mxu0 %vm2730_vm0, %v2729_v1  ;;  %v2303_v62 = vld [vmem:[%s3251_s10] ss:$0 sm:$0xff] }
 0x3c1   : > { %v1747_v4 = vpack.c.bf16 %v1648_v3, %v1648_v3  ;;  %2556 = vmatprep.subr.bf16.mxu0 %v2729_v1  ;;  %v2645_v3 = vld [vmem:[%s3254_s13 + $0x8] sm:$0xff]  }
 0x3c2   : > { %v2513_v6 = vpop.f32.mrf.mxu0  ;;  %v2518_v8 = vpop.f32.mrf.mxu1 }
 0x3c3   : > { %2541 = vmatmul.mubr.msk.bf16.vlgmr.msra.gmra.mxu1 %vm1324_vm2, %v1747_v4  ;;  %v2646_v4 = vld [vmem:[%s3254_s13] sm:$0xff]  }
 0x3c4   : > { %v1651_v9 = vpop.f32.mrf.mxu1  ;;  %v1694_v10 = vpop.f32.mrf.mxu0  ;;  %2551 = vmatpush3.bf16.msra.mxu1 %v1892_v5  ;;  %2552 = vmatprep.mubr.msk.bf16.mxu1 %vm2730_vm0, %v2729_v1  ;;  %v2304_v5 = vld [vmem:[%s3253_s12] ss:$0 sm:$0xff] }
 0x3c5   : > { %v1748_v11 = vpack.c.bf16 %v1694_v10, %v1694_v10  ;;  %2564 = vmatprep.subr.bf16.mxu1 %v2729_v1 }
 0x3c6   : > { %v2519_v12 = vpop.f32.mrf.mxu1  ;;  %v2524_v13 = vpop.f32.mrf.mxu0 }
 0x3c7   : > { %2547 = vmatmul.mubr.msk.bf16.vlgmr.msra.gmra.mxu0 %vm1324_vm2, %v1748_v11 }
 0x3c8   : > { %v1697_v14 = vpop.f32.mrf.mxu0  ;;  %v1740_v15 = vpop.f32.mrf.mxu1  ;;  %2560 = vmatprep.mubr.msk.bf16.mxu0 %vm2730_vm0, %v2729_v1  ;;  %2557 = vmatpush3.bf16.msra.mxu0 %v2641_v53 }
 0x3c9   : > { %v1749_v16 = vpack.c.bf16 %v1740_v15, %v1740_v15  ;;  %2558 = vmatprep.subr.bf16.mxu0 %v2729_v1 }
 0x3ca   : > { %v2525_v17 = vpop.f32.mrf.mxu0  ;;  %v2530_v18 = vpop.f32.mrf.mxu1 }
 0x3cb   : > { %2553 = vmatmul.mubr.msk.bf16.vlgmr.msra.gmra.mxu1 %vm1324_vm2, %v1749_v16 }
 0x3cc   : > { %v1743_v19 = vpop.f32.mrf.mxu1  ;;  %2572 = vmatprep.mubr.msk.bf16.mxu1 %vm2730_vm0, %v2729_v1  ;;  %2559 = vmatpush3.bf16.msra.mxu0 %v2642_v54 }
 0x3ce   : > { %v2531_v20 = vpop.f32.mrf.mxu1 }
 0x47f   : > { %v1790_v21 = vpop.f32.mrf.mxu0 }
 0x480   : > { %v1934_v30 = vsel %vm648_vm1, %v1790_v21, 0.0 }
 0x481   : > { %v2536_v22 = vpop.f32.mrf.mxu0 }
 0x483   : > { %v1793_v23 = vpop.f32.mrf.mxu0  ;;  %v1836_v24 = vpop.f32.mrf.mxu1 }
 0x484   : > { %v1935_v27 = vsel %vm648_vm1, %v1836_v24, 0.0 }
 0x485   : > { %v2537_v25 = vpop.f32.mrf.mxu0  ;;  %v2542_v26 = vpop.f32.mrf.mxu1  ;;  %v1936_v32 = vadd.f32 %v1935_v27, %v1934_v30  ;;  %v2314_v30 = vld [vmem:[%s3256_s15] ss:$0 sm:$0xff] }
 0x487   : > { %v1839_v28 = vpop.f32.mrf.mxu1  ;;  %v1882_v29 = vpop.f32.mrf.mxu0 }
 0x488   : > { %v1937_v31 = vsel %vm648_vm1, %v1882_v29, 0.0 }
 0x489   : > { %v2543_v33 = vpop.f32.mrf.mxu1  ;;  %v2548_v34 = vpop.f32.mrf.mxu0  ;;  %v1938_v35 = vadd.f32 %v1937_v31, %v1936_v32  ;;  %v2315_v32 = vld [vmem:[%s3257_s16] ss:$0 sm:$0xff] }
 0x48b   : > { %v1885_v36 = vpop.f32.mrf.mxu0  ;;  %v1928_v37 = vpop.f32.mrf.mxu1 }
 0x48c   : > { %v1939_v39 = vsel %vm648_vm1, %v1928_v37, 0.0 }
 0x48d   : > { %v1940_v40 = vadd.f32 %v1939_v39, %v1938_v35  ;;  %v2549_v41 = vpop.f32.mrf.mxu0  ;;  %v2554_v42 = vpop.f32.mrf.mxu1 }
 0x48f   : > { %v1947_v44 = vadd.f32 %v2301_v38, %v1940_v40  ;;  %v1931_v45 = vpop.f32.mrf.mxu1 }
 0x491   : > { %v2555_v46 = vpop.f32.mrf.mxu1  ;;  %v1948_v47 = vadd.f32 %v1947_v44, %v2902_v7  ;;  %v2643_v7 = vld [vmem:[%s3254_s13 + $0x18] sm:$0xff]  }
 0x492   : > { %2565 = vmatpush3.bf16.msra.mxu1 %v2643_v7 }
 0x493   : > { %v1951_v43 = vsel %vm648_vm1, %v1948_v47, 0.0  ;;  %2566 = vmatprep.subr.bf16.mxu1 %v2729_v1 }
 0x494   : > { %1952 = vadd.xlane.f32.xlu0 %v1951_v43 }
 0x496   : > { %2567 = vmatpush3.bf16.msra.mxu1 %v2644_v55 }
 0x497   : > { %2568 = vmatprep.subr.bf16.mxu1 %v2729_v1 }
 0x49a   : > { %2569 = vmatpush3.bf16.msra.mxu1 %v2645_v3 }
 0x49b   : > { %2570 = vmatprep.subr.bf16.mxu1 %v2729_v1  ;;  %v2308_v1 = vld [vmem:[%s3255_s14] ss:$0 sm:$0xff] }
 0x49e   : > { %2571 = vmatpush3.bf16.msra.mxu1 %v2646_v4 }
 0x51d   : > { %v1953_v49 = vpop.xlane.xlu0 %1952 }
 0x51e   : > { %v1955_v48 = vmul.f32 0.03125, %v1953_v49 }
 0x520   : > { %v1956_v50 = vsub.f32 %v1948_v47, %v1955_v48 }
 0x522   : > { %v1957_v51 = vmul.f32 %v1956_v50, %v1956_v50 }
 0x524   : > { %v1958_v52 = vsel %vm648_vm1, %v1957_v51, 0.0 }
 0x525   : > { %1959 = vadd.xlane.f32.xlu1 %v1958_v52 }
 0x5ae   : > { %v1960_v56 = vpop.xlane.xlu1 %1959 }
 0x5af   : > { %v1961_v57 = vmul.f32 0.03125, %v1960_v56 }
 0x5b1   : > { %v1962_v58 = vadd.f32 1e-05, %v1961_v57 }
 0x5b3   : > { %2663 = vrsqrt.f32 %v1962_v58 }
 0x5c0   : > { %v2664_v59 = vpop.eup %2663 }
 0x5c1   : > { %v1964_v61 = vmul.f32 %v2664_v59, %v1956_v50 }
 0x5c3   : > { %v1971_v63 = vmul.f32 %v2302_v60, %v1964_v61 }
 0x5c5   : > { %v1978_v0 = vadd.f32 %v2303_v62, %v1971_v63 }
 0x5c7   : > { %v1983_v2 = vpack.c.bf16 %v1978_v0, %v1978_v0 }
 0x5c9   : > { %2561 = vmatmul.mubr.msk.bf16.vlgmr.msra.gmra.mxu0 %vm648_vm1, %v1983_v2 }
 0x689   : > { %v2040_v6 = vpop.f32.mrf.mxu0 }
 0x68a   : > { %v2041_v8 = vadd.f32 %v2304_v5, %v2040_v6 }
 0x68b   : > { %v2562_v9 = vpop.f32.mrf.mxu0 }
 0x68c   : > { %v2046_v10 = vmax.f32 %v2041_v8, 0.0 }
 0x68d   : > { %v2043_v11 = vpop.f32.mrf.mxu0 }
 0x68e   : > { %v2055_v12 = vpack.c.bf16 %v2046_v10, %v2046_v10 }
 0x68f   : > { %v2563_v13 = vpop.f32.mrf.mxu0 }
 0x690   : > { %2573 = vmatmul.mubr.msk.bf16.vlgmr.msra.gmra.mxu1 %vm2087_vm4, %v2055_v12 }
 0x750   : > { %v2125_v14 = vpop.f32.mrf.mxu1 }
 0x751   : > { %v2126_v15 = vadd.f32 %v2308_v1, %v2125_v14 }
 0x752   : > { %v2574_v16 = vpop.f32.mrf.mxu1 }
 0x753   : > { %v2131_v17 = vadd.f32 %v2126_v15, %v1978_v0 }
 0x754   : > { %v2128_v18 = vpop.f32.mrf.mxu1 }
 0x755   : > { %v2134_v19 = vsel %vm648_vm1, %v2131_v17, 0.0 }
 0x756   : > { %2135 = vadd.xlane.f32.xlu0 %v2134_v19  ;;  %v2575_v20 = vpop.f32.mrf.mxu1 }
 0x7df   : > { %v2136_v21 = vpop.xlane.xlu0 %2135 }
 0x7e0   : > { %v2137_v22 = vmul.f32 0.03125, %v2136_v21 }
 0x7e2   : > { %v2138_v23 = vsub.f32 %v2131_v17, %v2137_v22 }
 0x7e4   : > { %v2139_v24 = vmul.f32 %v2138_v23, %v2138_v23 }
 0x7e6   : > { %v2140_v25 = vsel %vm648_vm1, %v2139_v24, 0.0 }
 0x7e7   : > { %2141 = vadd.xlane.f32.xlu1 %v2140_v25 }
 0x870   : > { %v2142_v26 = vpop.xlane.xlu1 %2141 }
 0x871   : > { %v2143_v27 = vmul.f32 0.03125, %v2142_v26 }
 0x873   : > { %v2144_v28 = vadd.f32 1e-05, %v2143_v27 }
 0x875   : > { %2665 = vrsqrt.f32 %v2144_v28 }
 0x882   : > { %v2666_v29 = vpop.eup %2665 }
 0x883   : > { %v2146_v31 = vmul.f32 %v2666_v29, %v2138_v23 }
 0x885   : > { %v2153_v33 = vmul.f32 %v2314_v30, %v2146_v31 }
 0x887   : > { %v2160_v34 = vadd.f32 %v2315_v32, %v2153_v33 }
 0x889   : > { %2161 = vst.msk [vmem:[%s539_s18] sm:$0xff] %vm648_vm1, %v2160_v34 }
 0x88a   : > { %2680 = shalt.err (!%p2677_p3)
}
 0x88b   : > { %s2681_s2 = scalar_lea.hbm %s2174_s3, 128  ;;  %s2685_s19 = scalar_lea.hbm %s3258_s17, 256 }
 0x88c   : > { %p2682_p4 = scmp.ne.s32.totalorder %s2174_s3, %s2681_s2  ;;  %p2686_p9 = scmp.lt.s32.totalorder %s2174_s3, %s3258_s17 }
 0x88d   : > { %p2687_p10 = scmp.lt.s32.totalorder %s2685_s19, %s2681_s2 }
 0x88e   : > { %p2683_p7 = pnand %p2682_p4, %p2860_p5 }
 0x88f   : > { %p2688_p11 = por %p2687_p10, %p2686_p9 }
 0x890   : > { %p2684_p8 = pneg %p2683_p7 }
 0x892   : > { %p2689_p12 = pnand %p2688_p11, %p2684_p8 }
 0x894   : > { %2692 = shalt.err (!%p2689_p12)
}
 0x895   : > { %2576 = dma.vmem_to_hbm [thread:$0]  (%p2860_p5), %s2177_s21, 128, %s2174_s3, %s2163_s4  }
 0x896 PF: > { %s3282_s22 = sld [smem:[#allocation5_spill]]  ;;  %p2582_p13 = scmp.ge.s32.totalorder %s2727_s27, 2 }
 0x898   : > { %p2579_p0 = pnand %p2582_p13, %p2864_p6 }
 0x89a   : > { %p2580_p1 = pneg %p2579_p0 }
 0x89c   : > { %s2188_s20 = sand.u32 1, %s3282_s22  }
 0x89d   : > { %s2189_s29 = scalar_lea.sflag [#allocation3], %s2188_s20 }
 0x89e   : > { %2710 = dma.done.wait (%p2580_p1), %s2189_s29, 128  }
 0x89f   : > { %2712 = vsyncadd (%p2580_p1), %s2189_s29, 4294967168  ;;  %s3284_s27 = sld [smem:[#allocation7_spill]]  ;;  %s3287_s24 = smov %s2719_s25 }
 0x8a0   : > { %s3285_s28 = sld [smem:[#allocation6_spill]] }
 0x8a1   : > { %s3286_s26 = sld [smem:[#allocation8_spill]] }
 0x8a5   : > { %p27_p2 = scmp.ge.s32.totalorder %s3284_s27, 4  }
 0x8a6   : > { %s3288_s25 = smov %s3285_s28 }
 0x8a7   :  { %29 = sbr.rel (!%p27_p2) target bundleno = 9 (0x9), region = 123 }
 0x8ac   :  { %2194 = vsyncpa [#allocation3], 1 }
 0x8ad   :  { %2196 = vsyncpa [#allocation3 + $0x1], 1 }

</bundles_post_ra>
